<compile_context>
chip_gen: v5e
topology: v5e:2x2
jax: 0.10.0
libtpu: 0.0.40
codegen_flags: <defaults>
</compile_context>

<pallas_src>
import jax
import jax.numpy as jnp
import numpy as np
from jax import lax
from jax.experimental import pallas as pl
from jax.experimental.pallas import tpu as pltpu


def _rcab_kernel(x_ref, w1_ref, b1_ref, w2_ref, b2_ref,
                 wd1_ref, bd1_ref, wd2_ref, bd2_ref, o_ref):
    """One image per grid step.  Everything is lane-dense: last dim = W*C."""
    x = x_ref[0]                                    # (H, W*C) f32
    wc = x.shape[1]
    zrow = jnp.zeros((1, wc), x.dtype)

    def conv3x3(inp, w_ref, b_ref):
        # Row (H) halo: one zero row above / below.  The column (W) halo is
        # encoded in w_ref's band structure, so no padded scratch / masking.
        rows_prev = jnp.concatenate([zrow, inp[:-1, :]], axis=0)   # row h-1
        rows_next = jnp.concatenate([inp[1:, :], zrow], axis=0)    # row h+1
        # Lane concat at W*C-aligned offsets -> (H, 3*W*C); single MXU push.
        xcat = jnp.concatenate([rows_prev, inp, rows_next], axis=1)
        return jnp.dot(xcat, w_ref[...],
                       preferred_element_type=jnp.float32) + b_ref[...]

    # conv3x3 -> ReLU -> conv3x3
    h1 = jnp.maximum(conv3x3(x, w1_ref, b1_ref), 0.0)
    h2 = conv3x3(h1, w2_ref, b2_ref)

    # CALayer: global avg pool -> 1x1 -> ReLU -> 1x1 -> sigmoid -> scale.
    # wd1_ref is pre-tiled/scaled so (row-sum) @ wd1 == (global mean) @ wd1;
    # wd2/bd2 are pre-tiled so the attention row is directly (1, W*C).
    ysum = jnp.sum(h2, axis=0, keepdims=True)                      # (1, W*C)
    z = jnp.maximum(
        jnp.dot(ysum, wd1_ref[...], preferred_element_type=jnp.float32)
        + bd1_ref[...], 0.0)                                       # (1, Cmid)
    s = jax.nn.sigmoid(
        jnp.dot(z, wd2_ref[...], preferred_element_type=jnp.float32)
        + bd2_ref[...])                                            # (1, W*C)

    # channel scale + residual add; lane-dense unmasked store.
    o_ref[0] = (h2 * s + x).astype(o_ref.dtype)


def _toeplitz_conv_weight(w_hwio, width):
    """Fold a (K, K, Cin, Cout) HWIO conv weight into (K*W*Cin, W*Cout).

    big[kh*W*Cin + w_in*Cin + ci, w_out*Cout + co] =
        w_hwio[kh, w_in - w_out + PAD, ci, co]   (0 where the tap is OOB),
    encoding both the kw shift and the zero padding along W.
    """
    K, _, cin, cout = w_hwio.shape
    pad = K // 2
    w_in = jnp.arange(width)[:, None]
    w_out = jnp.arange(width)[None, :]
    kw = w_in - w_out + pad                                        # (W, W)
    valid = (kw >= 0) & (kw < K)
    g = w_hwio[:, jnp.clip(kw, 0, K - 1), :, :]                    # (K,W,W,Ci,Co)
    g = jnp.where(valid[None, :, :, None, None], g, 0.0)
    g = jnp.transpose(g, (0, 1, 3, 2, 4))                          # (K,Win,Ci,Wout,Co)
    return g.reshape(K * width * cin, width * cout)


def rcab_forward(x_nchw, params):
    """RCAB forward.  Input/output NCHW (PyTorch convention)."""
    N, C, H, W = x_nchw.shape
    K = params["w1"].shape[0]
    Cmid = params["wd1"].shape[1]
    WC = W * C

    # NCHW -> NHWC -> lane-dense (N, H, W*C); no jnp.pad (halo handled in-kernel).
    x = jnp.transpose(x_nchw, (0, 2, 3, 1)).astype(jnp.float32).reshape(N, H, WC)

    # Wrapper-side weight plumbing (pure layout work).
    w1_big = _toeplitz_conv_weight(params["w1"].astype(jnp.float32), W)
    w2_big = _toeplitz_conv_weight(params["w2"].astype(jnp.float32), W)
    b1_big = jnp.tile(params["b1"].reshape(1, C), (1, W))          # (1, W*C)
    b2_big = jnp.tile(params["b2"].reshape(1, C), (1, W))          # (1, W*C)
    wd1_big = jnp.tile(params["wd1"], (W, 1)) / float(H * W)       # (W*C, Cmid)
    bd1 = params["bd1"].reshape(1, Cmid)
    wd2_big = jnp.tile(params["wd2"], (1, W))                      # (Cmid, W*C)
    bd2_big = jnp.tile(params["bd2"].reshape(1, C), (1, W))        # (1, W*C)

    out2d = pl.pallas_call(
        _rcab_kernel,
        out_shape=jax.ShapeDtypeStruct((N, H, WC), jnp.float32),
        grid=(N,),
        in_specs=[
            pl.BlockSpec((1, H, WC), lambda n: (n, 0, 0)),         # x (lane-dense)
            pl.BlockSpec((K * WC, WC), lambda n: (0, 0)),          # conv1 weight
            pl.BlockSpec((1, WC), lambda n: (0, 0)),               # conv1 bias
            pl.BlockSpec((K * WC, WC), lambda n: (0, 0)),          # conv2 weight
            pl.BlockSpec((1, WC), lambda n: (0, 0)),               # conv2 bias
            pl.BlockSpec((WC, Cmid), lambda n: (0, 0)),            # CA down weight
            pl.BlockSpec((1, Cmid), lambda n: (0, 0)),             # CA down bias
            pl.BlockSpec((Cmid, WC), lambda n: (0, 0)),            # CA up weight
            pl.BlockSpec((1, WC), lambda n: (0, 0)),               # CA up bias
        ],
        out_specs=pl.BlockSpec((1, H, WC), lambda n: (n, 0, 0)),   # lane-dense store
        compiler_params=pltpu.CompilerParams(
            dimension_semantics=("parallel",)),   # v7x: batch across both TCs
    )(x, w1_big, b1_big, w2_big, b2_big, wd1_big, bd1, wd2_big, bd2_big)

    out = out2d.reshape(N, H, W, C)
    return jnp.transpose(out, (0, 3, 1, 2))


def rcab_reference(x_nchw, params):
    """Plain-JAX reference (mirrors the PyTorch module)."""
    x = jnp.transpose(x_nchw, (0, 2, 3, 1)).astype(jnp.float32)

    def conv(h, w, b):
        y = lax.conv_general_dilated(
            h, w, (1, 1), "SAME",
            dimension_numbers=("NHWC", "HWIO", "NHWC"))
        return y + b.reshape(1, 1, 1, -1)

    h = jax.nn.relu(conv(x, params["w1"], params["b1"]))
    h = conv(h, params["w2"], params["b2"])
    pooled = jnp.mean(h, axis=(1, 2))                              # (N, C)
    z = jax.nn.relu(pooled @ params["wd1"] + params["bd1"])
    s = jax.nn.sigmoid(z @ params["wd2"] + params["bd2"])
    res = h * s[:, None, None, :] + x
    return jnp.transpose(res, (0, 3, 1, 2))


if __name__ == "__main__":
    # Shapes consistent with RCAB(conv, n_feat=16, kernel_size=3, reduction=4)
    N, C, H, W = 2, 16, 16, 16
    K = 3
    reduction = 4
    Cmid = C // reduction

    ks = jax.random.split(jax.random.PRNGKey(0), 9)
    params = {
        "w1":  jax.random.normal(ks[0], (K, K, C, C), jnp.float32) * 0.05,
        "b1":  jax.random.normal(ks[1], (1, C), jnp.float32) * 0.05,
        "w2":  jax.random.normal(ks[2], (K, K, C, C), jnp.float32) * 0.05,
        "b2":  jax.random.normal(ks[3], (1, C), jnp.float32) * 0.05,
        "wd1": jax.random.normal(ks[4], (C, Cmid), jnp.float32) * 0.1,
        "bd1": jax.random.normal(ks[5], (1, Cmid), jnp.float32) * 0.1,
        "wd2": jax.random.normal(ks[6], (Cmid, C), jnp.float32) * 0.1,
        "bd2": jax.random.normal(ks[7], (1, C), jnp.float32) * 0.1,
    }
    x = jax.random.normal(ks[8], (N, C, H, W), jnp.float32)

    out = jax.block_until_ready(rcab_forward(x, params))
    ref = jax.block_until_ready(rcab_reference(x, params))

    assert out.shape == x.shape
    np.testing.assert_allclose(np.asarray(out), np.asarray(ref),
                               rtol=1e-4, atol=1e-4)
    print("KERNEL_OK")
</pallas_src>

<mosaic_0001>
module attributes {stable_mosaic.version = 11 : i64} {
  func.func @_rcab_kernel(%arg0: i32, %arg1: memref<1x16x256xf32, #tpu.memory_space<vmem>>, %arg2: memref<768x256xf32, #tpu.memory_space<vmem>>, %arg3: memref<1x256xf32, #tpu.memory_space<vmem>>, %arg4: memref<768x256xf32, #tpu.memory_space<vmem>>, %arg5: memref<1x256xf32, #tpu.memory_space<vmem>>, %arg6: memref<256x4xf32, #tpu.memory_space<vmem>>, %arg7: memref<1x4xf32, #tpu.memory_space<vmem>>, %arg8: memref<4x256xf32, #tpu.memory_space<vmem>>, %arg9: memref<1x256xf32, #tpu.memory_space<vmem>>, %arg10: memref<1x16x256xf32, #tpu.memory_space<vmem>>) attributes {dimension_semantics = [#tpu.dimension_semantics<parallel>], iteration_bounds = array<i64: 2>, scalar_prefetch = 0 : i64, scratch_operands = 0 : i64, tpu.core_type = #tpu.core_type<tc>, window_params = [{transform_indices = @transform_0, window_bounds = array<i64: 1, 16, 256>}, {pipeline_mode = #tpu.pipeline_mode<synchronous>, transform_indices = @transform_1, window_bounds = array<i64: 768, 256>}, {pipeline_mode = #tpu.pipeline_mode<synchronous>, transform_indices = @transform_2, window_bounds = array<i64: 1, 256>}, {pipeline_mode = #tpu.pipeline_mode<synchronous>, transform_indices = @transform_3, window_bounds = array<i64: 768, 256>}, {pipeline_mode = #tpu.pipeline_mode<synchronous>, transform_indices = @transform_4, window_bounds = array<i64: 1, 256>}, {pipeline_mode = #tpu.pipeline_mode<synchronous>, transform_indices = @transform_5, window_bounds = array<i64: 256, 4>}, {pipeline_mode = #tpu.pipeline_mode<synchronous>, transform_indices = @transform_6, window_bounds = array<i64: 1, 4>}, {pipeline_mode = #tpu.pipeline_mode<synchronous>, transform_indices = @transform_7, window_bounds = array<i64: 4, 256>}, {pipeline_mode = #tpu.pipeline_mode<synchronous>, transform_indices = @transform_8, window_bounds = array<i64: 1, 256>}, {transform_indices = @transform_9, window_bounds = array<i64: 1, 16, 256>}]} {
    %c0 = arith.constant 0 : index
    %c0_0 = arith.constant 0 : index
    %c0_1 = arith.constant 0 : index
    %0 = vector.load %arg1[%c0, %c0_0, %c0_1] : memref<1x16x256xf32, #tpu.memory_space<vmem>>, vector<1x16x256xf32>
    %1 = vector.shape_cast %0 : vector<1x16x256xf32> to vector<16x256xf32>
    %cst = arith.constant 0.000000e+00 : f32
    %2 = vector.broadcast %cst : f32 to vector<1x256xf32>
    %3 = vector.extract_strided_slice %1 {offsets = [0, 0], sizes = [15, 256], strides = [1, 1]} : vector<16x256xf32> to vector<15x256xf32>
    %4 = tpu.concatenate %2, %3 in 0 : vector<1x256xf32>, vector<15x256xf32> -> vector<16x256xf32>
    %5 = vector.extract_strided_slice %1 {offsets = [1, 0], sizes = [15, 256], strides = [1, 1]} : vector<16x256xf32> to vector<15x256xf32>
    %6 = tpu.concatenate %5, %2 in 0 : vector<15x256xf32>, vector<1x256xf32> -> vector<16x256xf32>
    %7 = tpu.concatenate %4, %1, %6 in 1 : vector<16x256xf32>, vector<16x256xf32>, vector<16x256xf32> -> vector<16x768xf32>
    %c0_2 = arith.constant 0 : index
    %c0_3 = arith.constant 0 : index
    %8 = vector.load %arg2[%c0_2, %c0_3] : memref<768x256xf32, #tpu.memory_space<vmem>>, vector<768x256xf32>
    %cst_4 = arith.constant dense<0.000000e+00> : vector<16x256xf32>
    %9 = tpu.matmul %7, %8, %cst_4 {dimension_numbers = #tpu.dot_dimension_numbers<[1], [0], [0], [1], [0, 0, 1, 1], [], []>} : vector<16x768xf32>, vector<768x256xf32>, vector<16x256xf32> -> vector<16x256xf32>
    %c0_5 = arith.constant 0 : index
    %c0_6 = arith.constant 0 : index
    %10 = vector.load %arg3[%c0_5, %c0_6] : memref<1x256xf32, #tpu.memory_space<vmem>>, vector<1x256xf32>
    %11 = vector.broadcast %10 : vector<1x256xf32> to vector<16x256xf32>
    %12 = arith.addf %9, %11 : vector<16x256xf32>
    %cst_7 = arith.constant 0.000000e+00 : f32
    %13 = vector.broadcast %cst_7 : f32 to vector<16x256xf32>
    %14 = arith.maximumf %12, %13 : vector<16x256xf32>
    %15 = vector.extract_strided_slice %14 {offsets = [0, 0], sizes = [15, 256], strides = [1, 1]} : vector<16x256xf32> to vector<15x256xf32>
    %16 = tpu.concatenate %2, %15 in 0 : vector<1x256xf32>, vector<15x256xf32> -> vector<16x256xf32>
    %17 = vector.extract_strided_slice %14 {offsets = [1, 0], sizes = [15, 256], strides = [1, 1]} : vector<16x256xf32> to vector<15x256xf32>
    %18 = tpu.concatenate %17, %2 in 0 : vector<15x256xf32>, vector<1x256xf32> -> vector<16x256xf32>
    %19 = tpu.concatenate %16, %14, %18 in 1 : vector<16x256xf32>, vector<16x256xf32>, vector<16x256xf32> -> vector<16x768xf32>
    %c0_8 = arith.constant 0 : index
    %c0_9 = arith.constant 0 : index
    %20 = vector.load %arg4[%c0_8, %c0_9] : memref<768x256xf32, #tpu.memory_space<vmem>>, vector<768x256xf32>
    %cst_10 = arith.constant dense<0.000000e+00> : vector<16x256xf32>
    %21 = tpu.matmul %19, %20, %cst_10 {dimension_numbers = #tpu.dot_dimension_numbers<[1], [0], [0], [1], [0, 0, 1, 1], [], []>} : vector<16x768xf32>, vector<768x256xf32>, vector<16x256xf32> -> vector<16x256xf32>
    %c0_11 = arith.constant 0 : index
    %c0_12 = arith.constant 0 : index
    %22 = vector.load %arg5[%c0_11, %c0_12] : memref<1x256xf32, #tpu.memory_space<vmem>>, vector<1x256xf32>
    %23 = vector.broadcast %22 : vector<1x256xf32> to vector<16x256xf32>
    %24 = arith.addf %21, %23 : vector<16x256xf32>
    %cst_13 = arith.constant dense<0.000000e+00> : vector<256xf32>
    %25 = vector.multi_reduction <add>, %24, %cst_13 [0] : vector<16x256xf32> to vector<256xf32>
    %26 = vector.shape_cast %25 : vector<256xf32> to vector<1x256xf32>
    %c0_14 = arith.constant 0 : index
    %c0_15 = arith.constant 0 : index
    %27 = vector.load %arg6[%c0_14, %c0_15] : memref<256x4xf32, #tpu.memory_space<vmem>>, vector<256x4xf32>
    %cst_16 = arith.constant dense<0.000000e+00> : vector<1x4xf32>
    %28 = tpu.matmul %26, %27, %cst_16 {dimension_numbers = #tpu.dot_dimension_numbers<[1], [0], [0], [1], [0, 0, 1, 1], [], []>} : vector<1x256xf32>, vector<256x4xf32>, vector<1x4xf32> -> vector<1x4xf32>
    %c0_17 = arith.constant 0 : index
    %c0_18 = arith.constant 0 : index
    %29 = vector.load %arg7[%c0_17, %c0_18] : memref<1x4xf32, #tpu.memory_space<vmem>>, vector<1x4xf32>
    %30 = arith.addf %28, %29 : vector<1x4xf32>
    %cst_19 = arith.constant 0.000000e+00 : f32
    %31 = vector.broadcast %cst_19 : f32 to vector<1x4xf32>
    %32 = arith.maximumf %30, %31 : vector<1x4xf32>
    %c0_20 = arith.constant 0 : index
    %c0_21 = arith.constant 0 : index
    %33 = vector.load %arg8[%c0_20, %c0_21] : memref<4x256xf32, #tpu.memory_space<vmem>>, vector<4x256xf32>
    %cst_22 = arith.constant dense<0.000000e+00> : vector<1x256xf32>
    %34 = tpu.matmul %32, %33, %cst_22 {dimension_numbers = #tpu.dot_dimension_numbers<[1], [0], [0], [1], [0, 0, 1, 1], [], []>} : vector<1x4xf32>, vector<4x256xf32>, vector<1x256xf32> -> vector<1x256xf32>
    %c0_23 = arith.constant 0 : index
    %c0_24 = arith.constant 0 : index
    %35 = vector.load %arg9[%c0_23, %c0_24] : memref<1x256xf32, #tpu.memory_space<vmem>>, vector<1x256xf32>
    %36 = arith.addf %34, %35 : vector<1x256xf32>
    %37 = arith.negf %36 : vector<1x256xf32>
    %38 = math.exp %37 : vector<1x256xf32>
    %cst_25 = arith.constant 1.000000e+00 : f32
    %39 = vector.broadcast %cst_25 : f32 to vector<1x256xf32>
    %40 = arith.addf %39, %38 : vector<1x256xf32>
    %41 = arith.divf %39, %40 : vector<1x256xf32>
    %42 = vector.broadcast %41 : vector<1x256xf32> to vector<16x256xf32>
    %43 = arith.mulf %24, %42 : vector<16x256xf32>
    %44 = arith.addf %43, %1 : vector<16x256xf32>
    %c0_26 = arith.constant 0 : index
    %c0_27 = arith.constant 0 : index
    %c0_28 = arith.constant 0 : index
    %45 = vector.load %arg10[%c0_26, %c0_27, %c0_28] : memref<1x16x256xf32, #tpu.memory_space<vmem>>, vector<1x16x256xf32>
    %46 = vector.shape_cast %45 : vector<1x16x256xf32> to vector<16x256xf32>
    %47 = vector.shape_cast %44 : vector<16x256xf32> to vector<1x16x256xf32>
    tpu.vector_store %arg10[%c0_26, %c0_27, %c0_28], %47 {strides = array<i32>} : memref<1x16x256xf32, #tpu.memory_space<vmem>>, vector<1x16x256xf32>,
    return
  }
  func.func @transform_0(%arg0: i32) -> (i32, i32, i32) {
    %c0_i32 = arith.constant 0 : i32
    %c0_i32_0 = arith.constant 0 : i32
    %c0_i32_1 = arith.constant 0 : i32
    return %arg0, %c0_i32, %c0_i32_0 : i32, i32, i32
  }
  func.func @transform_1(%arg0: i32) -> (i32, i32) {
    %c0_i32 = arith.constant 0 : i32
    %c0_i32_0 = arith.constant 0 : i32
    %c0_i32_1 = arith.constant 0 : i32
    return %c0_i32, %c0_i32_0 : i32, i32
  }
  func.func @transform_2(%arg0: i32) -> (i32, i32) {
    %c0_i32 = arith.constant 0 : i32
    %c0_i32_0 = arith.constant 0 : i32
    %c0_i32_1 = arith.constant 0 : i32
    return %c0_i32, %c0_i32_0 : i32, i32
  }
  func.func @transform_3(%arg0: i32) -> (i32, i32) {
    %c0_i32 = arith.constant 0 : i32
    %c0_i32_0 = arith.constant 0 : i32
    %c0_i32_1 = arith.constant 0 : i32
    return %c0_i32, %c0_i32_0 : i32, i32
  }
  func.func @transform_4(%arg0: i32) -> (i32, i32) {
    %c0_i32 = arith.constant 0 : i32
    %c0_i32_0 = arith.constant 0 : i32
    %c0_i32_1 = arith.constant 0 : i32
    return %c0_i32, %c0_i32_0 : i32, i32
  }
  func.func @transform_5(%arg0: i32) -> (i32, i32) {
    %c0_i32 = arith.constant 0 : i32
    %c0_i32_0 = arith.constant 0 : i32
    %c0_i32_1 = arith.constant 0 : i32
    return %c0_i32, %c0_i32_0 : i32, i32
  }
  func.func @transform_6(%arg0: i32) -> (i32, i32) {
    %c0_i32 = arith.constant 0 : i32
    %c0_i32_0 = arith.constant 0 : i32
    %c0_i32_1 = arith.constant 0 : i32
    return %c0_i32, %c0_i32_0 : i32, i32
  }
  func.func @transform_7(%arg0: i32) -> (i32, i32) {
    %c0_i32 = arith.constant 0 : i32
    %c0_i32_0 = arith.constant 0 : i32
    %c0_i32_1 = arith.constant 0 : i32
    return %c0_i32, %c0_i32_0 : i32, i32
  }
  func.func @transform_8(%arg0: i32) -> (i32, i32) {
    %c0_i32 = arith.constant 0 : i32
    %c0_i32_0 = arith.constant 0 : i32
    %c0_i32_1 = arith.constant 0 : i32
    return %c0_i32, %c0_i32_0 : i32, i32
  }
  func.func @transform_9(%arg0: i32) -> (i32, i32, i32) {
    %c0_i32 = arith.constant 0 : i32
    %c0_i32_0 = arith.constant 0 : i32
    %c0_i32_1 = arith.constant 0 : i32
    return %arg0, %c0_i32, %c0_i32_0 : i32, i32, i32
  }
}

</mosaic_0001>

<bundles_post_ra>
// kernel: tpu_custom_call.1
= control target key start
LH: loop header
LB: loop body
LE: loop exit
PB: predicated region body
PF: predicated region fallthrough
CT: control target
= control target key end

     0   :  { %14 = vsyncpa [#allocation3], 0  ;;  %s2386_s0 = inlined_call_operand.vmem [shape: f32[2,16,256], index: 0, kind: input, shape index: {}]   ;;  %s2387_s1 = inlined_call_operand.hbm [shape: f32[768,256], index: 1, kind: input, shape index: {}]   ;;  %s2388_s2 = inlined_call_operand.vmem [shape: f32[1,256], index: 2, kind: input, shape index: {}]   ;;  %s2389_s3 = inlined_call_operand.hbm [shape: f32[768,256], index: 3, kind: input, shape index: {}]   ;;  %s2390_s4 = inlined_call_operand.vmem [shape: f32[1,256], index: 4, kind: input, shape index: {}]   ;;  %s2391_s5 = inlined_call_operand.vmem [shape: f32[256,4], index: 5, kind: input, shape index: {}]   ;;  %s2392_s6 = inlined_call_operand.vmem [shape: f32[1,4], index: 6, kind: input, shape index: {}]   ;;  %s2393_s7 = inlined_call_operand.vmem [shape: f32[4,256], index: 7, kind: input, shape index: {}]   ;;  %s2394_s8 = inlined_call_operand.vmem [shape: f32[1,256], index: 8, kind: input, shape index: {}]   ;;  %s2395_s9 = inlined_call_operand.hbm [shape: f32[2,16,256], index: 9, kind: output, shape index: {}]  }
   0x1   :  { %15 = vsyncpa [#allocation6], 0 }
   0x2   :  { %16 = vsyncpa [#allocation4], 0 }
   0x3   :  { %18 = vsyncpa [#allocation4 + $0x1], 0  ;;  %s1991_s30 = smov 0   ;;  %s1993_s10 = smov 0  }
   0x4   :  { %s1995_s11 = smov 0   ;;  %s1997_s12 = smov 0  }
   0x5 LB: > { %s2012_s13 = sadd.s32 4294967295, %s1933_s12   ;;  %s1679_s14 = sadd.s32 4294967294, %s1933_s12   ;;  %s1933_s12 = sphi %s1997_s12, %s2404_s12   ;;  %s1929_s11 = sphi %s1995_s11, %s2403_s11   ;;  %s1925_s10 = sphi %s1993_s10, %s2402_s10   ;;  %s1921_s30 = sphi %s1991_s30, %s2401_s30  }
   0x6   : > { %s2016_s15 = sadd.s32 1, %s1933_s12   ;;  %s225_s16 = sadd.s32 1, %s1929_s11 }
   0x7   : > { %s222_s17 = ssub.s32 %s1933_s12, %s2016_s15  ;;  %p235_p0 = scmp.ne.s32.totalorder %s1929_s11, %s1925_s10 }
   0x8   : > { %p223_p1 = scmp.eq.s32.totalorder %s222_s17, 0  ;;  %p236_p2 = scmp.eq.s32.totalorder %s2012_s13, 1 }
   0x9   : > { %p241_p3 = scmp.ne.s32.totalorder %s1925_s10, %s1921_s30  ;;  %p242_p4 = scmp.eq.s32.totalorder %s1679_s14, 1 }
   0xa   : > { %s2027_s18 = scalar_select %p223_p1, %s1929_s11, %s225_s16  }
   0xb   : > { %p2029_p5 = por %p236_p2, %p235_p0  ;;  %p2033_p6 = por %p242_p4, %p241_p3 }
   0xc   : > { %p1680_p7 = scmp.ge.s32.totalorder %s1933_s12, 1  ;;  %p249_p8 = scmp.lt.s32.totalorder %s1933_s12, 3 }
   0xd   : > { %p1748_p9 = scmp.eq.s32.totalorder %s2012_s13, 0  ;;  %s260_s24 = sshll.u32 %s2387_s1, 4  ;;  %s261_s24 = int_to_ptr.hbm [resolvable:$true] %s260_s24 }
   0xe   : > { %p2040_p10 = pnand %p1680_p7, %p249_p8  ;;  %s1935_s25 = smov [#allocation2]  }
   0xf   : > { %s262_s26 = sshll.u32 %s1935_s25, 4  ;;  %s277_s29 = sshll.u32 %s2389_s3, 4  ;;  %s263_s26 = int_to_ptr.vmem [resolvable:$true] %s262_s26  ;;  %s278_s29 = int_to_ptr.hbm [resolvable:$true] %s277_s29 }
  0x10   : > { %p1737_p11 = pneg %p2040_p10  ;;  %s1936_s14 = smov 256  }
  0x11   : > { %s1937_s16 = smov 16   ;;  %s1938_s17 = smov [#allocation5]  }
  0x12   : > { %p1738_p12 = pnand %p1748_p9, %p1737_p11  ;;  %s279_s22 = sshll.u32 %s1938_s17, 4  ;;  %s280_s22 = int_to_ptr.vmem [resolvable:$true] %s279_s22 }
  0x13   : > { %318 = sbr.rel (%p2040_p10) target bundleno = 764 (0x2fc), region = 56 }
  0x14   : > { %1740 = dma.hbm_to_vmem [thread:$0]  (!%p1738_p12), %s261_s24, 24576, %s263_s26, [#allocation3], %s1936_s14, %s1936_s14, %s1937_s16  }
  0x15   : > { %1743 = dma.hbm_to_vmem [thread:$0]  (!%p1738_p12), %s278_s29, 24576, %s280_s22, [#allocation6], %s1936_s14, %s1936_s14, %s1937_s16  }
  0x18   : > { %1908 = dma.done.wait (%p1748_p9), [#allocation3], 24576  }
  0x19   : > { %1910 = vsyncadd (%p1748_p9), [#allocation3], 4294942720 }
  0x1a   : > { %1912 = dma.done.wait (%p1748_p9), [#allocation6], 24576  }
  0x1b   : > { %1914 = vsyncadd (%p1748_p9), [#allocation6], 4294942720  ;;  %v429_v0 = vld [vmem:[#allocation2 + $0xf0] sm:$0xff]  ;;  %v427_v2 = vld [vmem:[#allocation2 + $0xe0] sm:$0xff]  ;;  %p360_p13 = scmp.lt.s32.totalorder %s2012_s13, 1  ;;  %vm373_vm0 = vcmask 1040384  }
  0x1c   : > { %v493_v1 = vld [vmem:[#allocation2 + $0x2f0] sm:$0xff]  ;;  %597 = vmatpush.msra.mxu0 %v429_v0  ;;  %v491_v4 = vld [vmem:[#allocation2 + $0x2e0] sm:$0xff]  ;;  %v430_v63 = vld [vmem:[#allocation2 + $0xf8] sm:$0xff]  ;;  %vm386_vm2 = vcmask 1046528   ;;  %vm1482_vm3 = vcmask 1043456   ;;  %vm1478_vm4 = vcmask 31744  }
  0x1d   : > { %643 = vmatpush.msra.mxu2 %v493_v1  ;;  %v461_v3 = vld [vmem:[#allocation2 + $0x1f0] sm:$0xff]  ;;  %v459_v7 = vld [vmem:[#allocation2 + $0x1e0] sm:$0xff]  ;;  %s2068_s21 = scalar_select %p360_p13, %s2012_s13, 1  ;;  %vm2086_vm1 = vmneg %vm373_vm0 }
  0x1e   : > { %v525_v5 = vld [vmem:[#allocation2 + $0x3f0] sm:$0xff]  ;;  %620 = vmatpush.msra.mxu1 %v461_v3  ;;  %598 = vmatpush.msra.mxu0 %v427_v2  ;;  %v523_v9 = vld [vmem:[#allocation2 + $0x3e0] sm:$0xff]  ;;  %s1726_s25 = sshll.u32 %s2012_s13, 5 }
  0x1f   : > { %666 = vmatpush.msra.mxu3 %v525_v5  ;;  %v425_v6 = vld [vmem:[#allocation2 + $0xd0] sm:$0xff]  ;;  %644 = vmatpush.msra.mxu2 %v491_v4  ;;  %v423_v11 = vld [vmem:[#allocation2 + $0xc0] sm:$0xff]  ;;  %v428_v4 = vld [vmem:[#allocation2 + $0xe8] sm:$0xff]  ;;  %s1725_s23 = sshll.u32 %s2068_s21, 5  ;;  %s1591_s29 = scalar_lea.hbm %s2395_s9, %s1726_s25 }
  0x20   : > { %v489_v8 = vld [vmem:[#allocation2 + $0x2d0] sm:$0xff]  ;;  %621 = vmatpush.msra.mxu1 %v459_v7  ;;  %v487_v12 = vld [vmem:[#allocation2 + $0x2c0] sm:$0xff]  ;;  %599 = vmatpush.msra.mxu0 %v425_v6  ;;  %v462_v5 = vld [vmem:[#allocation2 + $0x1f8] sm:$0xff]  ;;  %s2074_s26 = scalar_lea.vmem %s2386_s0, %s1725_s23  ;;  %s357_s23 = sand.u32 1, %s1925_s10  }
  0x21   : > { %v457_v10 = vld [vmem:[#allocation2 + $0x1d0] sm:$0xff]  ;;  %667 = vmatpush.msra.mxu3 %v523_v9  ;;  %645 = vmatpush.msra.mxu2 %v489_v8  ;;  %v455_v14 = vld [vmem:[#allocation2 + $0x1c0] sm:$0xff]  ;;  %v426_v8 = vld [vmem:[#allocation2 + $0xd8] sm:$0xff]  ;;  %s1687_s24 = sshll.u32 %s357_s23, 5  ;;  %s1594_s16 = sshll.u32 %s1591_s29, 4  ;;  %s1595_s16 = int_to_ptr.hbm [resolvable:$true] %s1594_s16 }
  0x22   : > { %v521_v13 = vld [vmem:[#allocation2 + $0x3d0] sm:$0xff]  ;;  %v519_v15 = vld [vmem:[#allocation2 + $0x3c0] sm:$0xff]  ;;  %622 = vmatpush.msra.mxu1 %v457_v10  ;;  %600 = vmatpush.msra.mxu0 %v423_v11  ;;  %v460_v9 = vld [vmem:[#allocation2 + $0x1e8] sm:$0xff]  ;;  %s359_s13 = scalar_lea.vmem [#allocation7], %s1687_s24  ;;  %s1580_s17 = scalar_lea.sflag [#allocation4], %s357_s23 }
  0x23   : > { %668 = vmatpush.msra.mxu3 %v521_v13  ;;  %v421_v16 = vld [vmem:[#allocation2 + $0xb0] sm:$0xff]  ;;  %646 = vmatpush.msra.mxu2 %v487_v12  ;;  %v419_v20 = vld [vmem:[#allocation2 + $0xa0] sm:$0xff]  ;;  %v424_v12 = vld [vmem:[#allocation2 + $0xc8] sm:$0xff]  ;;  %s1592_s14 = sshll.u32 %s359_s13, 4  ;;  %s1877_s22 = sshra.s32 %s1595_s16, 4  ;;  %s1593_s14 = int_to_ptr.vmem [resolvable:$true] %s1592_s14  ;;  %s1878_s22 = int_to_ptr.hbm [resolvable:$true] %s1877_s22 }
  0x24   : > { %v485_v17 = vld [vmem:[#allocation2 + $0x2b0] sm:$0xff]  ;;  %623 = vmatpush.msra.mxu1 %v455_v14  ;;  %v483_v21 = vld [vmem:[#allocation2 + $0x2a0] sm:$0xff]  ;;  %601 = vmatpush.msra.mxu0 %v421_v16  ;;  %v458_v13 = vld [vmem:[#allocation2 + $0x1d8] sm:$0xff]  ;;  %s1879_s21 = scalar_lea.hbm %s1878_s22, 32  ;;  %p1884_p3 = scmp.lt.s32.totalorder %s1878_s22, %s2395_s9 }
  0x25   : > { %v453_v18 = vld [vmem:[#allocation2 + $0x1b0] sm:$0xff]  ;;  %669 = vmatpush.msra.mxu3 %v519_v15  ;;  %647 = vmatpush.msra.mxu2 %v485_v17  ;;  %v451_v22 = vld [vmem:[#allocation2 + $0x1a0] sm:$0xff]  ;;  %v422_v16 = vld [vmem:[#allocation2 + $0xb8] sm:$0xff]  ;;  %p1880_p0 = scmp.ne.s32.totalorder %s1878_s22, %s1879_s21 }
  0x26   : > { %v517_v19 = vld [vmem:[#allocation2 + $0x3b0] sm:$0xff]  ;;  %v515_v23 = vld [vmem:[#allocation2 + $0x3a0] sm:$0xff]  ;;  %624 = vmatpush.msra.mxu1 %v453_v18  ;;  %602 = vmatpush.msra.mxu0 %v419_v20  ;;  %v456_v17 = vld [vmem:[#allocation2 + $0x1c8] sm:$0xff] }
  0x27   : > { %670 = vmatpush.msra.mxu3 %v517_v19  ;;  %v417_v24 = vld [vmem:[#allocation2 + $0x90] sm:$0xff]  ;;  %648 = vmatpush.msra.mxu2 %v483_v21  ;;  %v415_v28 = vld [vmem:[#allocation2 + $0x80] sm:$0xff]  ;;  %v420_v20 = vld [vmem:[#allocation2 + $0xa8] sm:$0xff]  ;;  %p1881_p1 = pnand %p1880_p0, %p2029_p5 }
  0x28   : > { %v481_v25 = vld [vmem:[#allocation2 + $0x290] sm:$0xff]  ;;  %625 = vmatpush.msra.mxu1 %v451_v22  ;;  %v479_v29 = vld [vmem:[#allocation2 + $0x280] sm:$0xff]  ;;  %603 = vmatpush.msra.mxu0 %v417_v24  ;;  %v454_v21 = vld [vmem:[#allocation2 + $0x1b8] sm:$0xff] }
  0x29   : > { %v449_v26 = vld [vmem:[#allocation2 + $0x190] sm:$0xff]  ;;  %671 = vmatpush.msra.mxu3 %v515_v23  ;;  %649 = vmatpush.msra.mxu2 %v481_v25  ;;  %v447_v30 = vld [vmem:[#allocation2 + $0x180] sm:$0xff]  ;;  %v2077_v24 = vld [vmem:[%s2074_s26] sm:$0xff]  ;;  %p1882_p2 = pneg %p1881_p1 }
  0x2a   : > { %v513_v27 = vld [vmem:[#allocation2 + $0x390] sm:$0xff]  ;;  %v511_v31 = vld [vmem:[#allocation2 + $0x380] sm:$0xff]  ;;  %626 = vmatpush.msra.mxu1 %v449_v26  ;;  %604 = vmatpush.msra.mxu0 %v415_v28  ;;  %v418_v25 = vld [vmem:[#allocation2 + $0x98] sm:$0xff] }
  0x2b   : > { %672 = vmatpush.msra.mxu3 %v513_v27  ;;  %v413_v32 = vld [vmem:[#allocation2 + $0x70] sm:$0xff]  ;;  %650 = vmatpush.msra.mxu2 %v479_v29  ;;  %v411_v36 = vld [vmem:[#allocation2 + $0x60] sm:$0xff]  ;;  %v452_v26 = vld [vmem:[#allocation2 + $0x1a8] sm:$0xff] }
  0x2c   : > { %v477_v33 = vld [vmem:[#allocation2 + $0x270] sm:$0xff]  ;;  %627 = vmatpush.msra.mxu1 %v447_v30  ;;  %v475_v37 = vld [vmem:[#allocation2 + $0x260] sm:$0xff]  ;;  %605 = vmatpush.msra.mxu0 %v413_v32  ;;  %v416_v30 = vld [vmem:[#allocation2 + $0x88] sm:$0xff]  ;;  %v2083_v32 = vrot.slane %v2077_v24, 7 }
  0x2d   : > { %v445_v34 = vld [vmem:[#allocation2 + $0x170] sm:$0xff]  ;;  %673 = vmatpush.msra.mxu3 %v511_v31  ;;  %651 = vmatpush.msra.mxu2 %v477_v33  ;;  %v443_v38 = vld [vmem:[#allocation2 + $0x160] sm:$0xff]  ;;  %v450_v31 = vld [vmem:[#allocation2 + $0x198] sm:$0xff] }
  0x2e   : > { %v509_v35 = vld [vmem:[#allocation2 + $0x370] sm:$0xff]  ;;  %v507_v39 = vld [vmem:[#allocation2 + $0x360] sm:$0xff]  ;;  %628 = vmatpush.msra.mxu1 %v445_v34  ;;  %606 = vmatpush.msra.mxu0 %v411_v36  ;;  %v414_v36 = vld [vmem:[#allocation2 + $0x78] sm:$0xff] }
  0x2f   : > { %674 = vmatpush.msra.mxu3 %v509_v35  ;;  %v409_v40 = vld [vmem:[#allocation2 + $0x50] sm:$0xff]  ;;  %652 = vmatpush.msra.mxu2 %v475_v37  ;;  %v407_v44 = vld [vmem:[#allocation2 + $0x40] sm:$0xff]  ;;  %v1072_v33 = vld [vmem:[#allocation5 + $0x538] sm:$0xff] }
  0x30   : > { %v473_v41 = vld [vmem:[#allocation2 + $0x250] sm:$0xff]  ;;  %629 = vmatpush.msra.mxu1 %v443_v38  ;;  %v471_v45 = vld [vmem:[#allocation2 + $0x240] sm:$0xff]  ;;  %607 = vmatpush.msra.mxu0 %v409_v40  ;;  %v448_v38 = vld [vmem:[#allocation2 + $0x188] sm:$0xff] }
  0x31   : > { %v441_v42 = vld [vmem:[#allocation2 + $0x150] sm:$0xff]  ;;  %675 = vmatpush.msra.mxu3 %v507_v39  ;;  %653 = vmatpush.msra.mxu2 %v473_v41  ;;  %v439_v46 = vld [vmem:[#allocation2 + $0x140] sm:$0xff]  ;;  %v2094_v39 = vld [vmem:[%s2074_s26 + $0x10] sm:$0xff] }
  0x32   : > { %v505_v43 = vld [vmem:[#allocation2 + $0x350] sm:$0xff]  ;;  %v503_v47 = vld [vmem:[#allocation2 + $0x340] sm:$0xff]  ;;  %630 = vmatpush.msra.mxu1 %v441_v42  ;;  %608 = vmatpush.msra.mxu0 %v407_v44  ;;  %v412_v42 = vld [vmem:[#allocation2 + $0x68] sm:$0xff] }
  0x33   : > { %676 = vmatpush.msra.mxu3 %v505_v43  ;;  %v405_v48 = vld [vmem:[#allocation2 + $0x30] sm:$0xff]  ;;  %654 = vmatpush.msra.mxu2 %v471_v45  ;;  %v403_v52 = vld [vmem:[#allocation2 + $0x20] sm:$0xff]  ;;  %v446_v43 = vld [vmem:[#allocation2 + $0x178] sm:$0xff] }
  0x34   : > { %v469_v49 = vld [vmem:[#allocation2 + $0x230] sm:$0xff]  ;;  %631 = vmatpush.msra.mxu1 %v439_v46  ;;  %v467_v53 = vld [vmem:[#allocation2 + $0x220] sm:$0xff]  ;;  %609 = vmatpush.msra.mxu0 %v405_v48  ;;  %v376_v46 = vrot.slane %v2094_v39, 7  ;;  %v410_v48 = vld [vmem:[#allocation2 + $0x58] sm:$0xff] }
  0x35   : > { %v437_v50 = vld [vmem:[#allocation2 + $0x130] sm:$0xff]  ;;  %677 = vmatpush.msra.mxu3 %v503_v47  ;;  %655 = vmatpush.msra.mxu2 %v469_v49  ;;  %v435_v54 = vld [vmem:[#allocation2 + $0x120] sm:$0xff]  ;;  %v444_v49 = vld [vmem:[#allocation2 + $0x168] sm:$0xff] }
  0x36   : > { %v501_v51 = vld [vmem:[#allocation2 + $0x330] sm:$0xff]  ;;  %v499_v55 = vld [vmem:[#allocation2 + $0x320] sm:$0xff]  ;;  %632 = vmatpush.msra.mxu1 %v437_v50  ;;  %610 = vmatpush.msra.mxu0 %v403_v52  ;;  %v408_v52 = vld [vmem:[#allocation2 + $0x48] sm:$0xff] }
  0x37   : > { %678 = vmatpush.msra.mxu3 %v501_v51  ;;  %v401_v56 = vld [vmem:[#allocation2 + $0x10] sm:$0xff]  ;;  %656 = vmatpush.msra.mxu2 %v467_v53  ;;  %v399_v60 = vld [vmem:[#allocation2] sm:$0xff] }
  0x38   : > { %v465_v57 = vld [vmem:[#allocation2 + $0x210] sm:$0xff]  ;;  %633 = vmatpush.msra.mxu1 %v435_v54  ;;  %v463_v61 = vld [vmem:[#allocation2 + $0x200] sm:$0xff]  ;;  %611 = vmatpush.msra.mxu0 %v401_v56  ;;  %v442_v54 = vld [vmem:[#allocation2 + $0x158] sm:$0xff] }
  0x39   : > { %v433_v58 = vld [vmem:[#allocation2 + $0x110] sm:$0xff]  ;;  %679 = vmatpush.msra.mxu3 %v499_v55  ;;  %657 = vmatpush.msra.mxu2 %v465_v57  ;;  %v431_v0 = vld [vmem:[#allocation2 + $0x100] sm:$0xff]  ;;  %v2109_v55 = vsel %vm373_vm0, %v2083_v32, %v376_v46  ;;  %v516_v46 = vld [vmem:[#allocation2 + $0x3a8] sm:$0xff] }
  0x3a   : > { %v497_v59 = vld [vmem:[#allocation2 + $0x310] sm:$0xff]  ;;  %634 = vmatpush.msra.mxu1 %v433_v58  ;;  %v495_v1 = vld [vmem:[#allocation2 + $0x300] sm:$0xff]  ;;  %612 = vmatpush.msra.mxu0 %v399_v60  ;;  %v406_v58 = vld [vmem:[#allocation2 + $0x38] sm:$0xff] }
  0x3b   : > { %v557_v62 = vld [vmem:[#allocation2 + $0x4f0] sm:$0xff]  ;;  %680 = vmatpush.msra.mxu3 %v497_v59  ;;  %658 = vmatpush.msra.mxu2 %v463_v61  ;;  %v555_v2 = vld [vmem:[#allocation2 + $0x4e0] sm:$0xff]  ;;  %v440_v59 = vld [vmem:[#allocation2 + $0x148] sm:$0xff] }
  0x3c   : > { %v589_v3 = vld [vmem:[#allocation2 + $0x5f0] sm:$0xff]  ;;  %689 = vmatpush.msrb.mxu0 %v557_v62  ;;  %635 = vmatpush.msra.mxu1 %v431_v0  ;;  %v587_v7 = vld [vmem:[#allocation2 + $0x5e0] sm:$0xff]  ;;  %v438_v0 = vld [vmem:[#allocation2 + $0x138] sm:$0xff] }
  0x3d   : > { %735 = vmatpush.msrb.mxu2 %v430_v63  ;;  %681 = vmatpush.msra.mxu3 %v495_v1  ;;  %v553_v6 = vld [vmem:[#allocation2 + $0x4d0] sm:$0xff]  ;;  %v551_v10 = vld [vmem:[#allocation2 + $0x4c0] sm:$0xff]  ;;  %v404_v63 = vld [vmem:[#allocation2 + $0x28] sm:$0xff] }
  0x3e   : > { %690 = vmatpush.msrb.mxu0 %v555_v2  ;;  %712 = vmatpush.msrb.mxu1 %v589_v3  ;;  %v585_v11 = vld [vmem:[#allocation2 + $0x5d0] sm:$0xff]  ;;  %v583_v15 = vld [vmem:[#allocation2 + $0x5c0] sm:$0xff]  ;;  %v387_v3 = vrot.slane %v2077_v24, 1 }
  0x3f   : > { %736 = vmatpush.msrb.mxu2 %v428_v4  ;;  %758 = vmatpush.msrb.mxu3 %v462_v5  ;;  %v549_v14 = vld [vmem:[#allocation2 + $0x4b0] sm:$0xff]  ;;  %v547_v18 = vld [vmem:[#allocation2 + $0x4a0] sm:$0xff]  ;;  %v2121_v4 = vrot.slane %v2094_v39, 1  ;;  %v402_v5 = vld [vmem:[#allocation2 + $0x18] sm:$0xff] }
  0x40   : > { %691 = vmatpush.msrb.mxu0 %v553_v6  ;;  %713 = vmatpush.msrb.mxu1 %v587_v7  ;;  %v581_v19 = vld [vmem:[#allocation2 + $0x5b0] sm:$0xff]  ;;  %v579_v23 = vld [vmem:[#allocation2 + $0x5a0] sm:$0xff]  ;;  %v436_v6 = vld [vmem:[#allocation2 + $0x128] sm:$0xff] }
  0x41   : > { %737 = vmatpush.msrb.mxu2 %v426_v8  ;;  %759 = vmatpush.msrb.mxu3 %v460_v9  ;;  %v545_v22 = vld [vmem:[#allocation2 + $0x490] sm:$0xff]  ;;  %v543_v27 = vld [vmem:[#allocation2 + $0x480] sm:$0xff]  ;;  %v400_v9 = vld [vmem:[#allocation2 + $0x8] sm:$0xff] }
  0x42   : > { %692 = vmatpush.msrb.mxu0 %v551_v10  ;;  %714 = vmatpush.msrb.mxu1 %v585_v11  ;;  %v577_v28 = vld [vmem:[#allocation2 + $0x590] sm:$0xff]  ;;  %v2080_v29 = vld [vmem:[%s2074_s26 + $0x8] sm:$0xff] }
  0x43   : > { %738 = vmatpush.msrb.mxu2 %v424_v12  ;;  %760 = vmatpush.msrb.mxu3 %v458_v13  ;;  %v575_v34 = vld [vmem:[#allocation2 + $0x580] sm:$0xff]  ;;  %v541_v35 = vld [vmem:[#allocation2 + $0x470] sm:$0xff]  ;;  %v2091_v37 = vrot.slane %v2080_v29, 7  ;;  %v390_v10 = vrot.slane %v2080_v29, 1  ;;  %v434_v12 = vld [vmem:[#allocation2 + $0x118] sm:$0xff]  ;;  %v2129_v13 = vsel %vm386_vm2, %v387_v3, %v2121_v4 }
  0x44   : > { %693 = vmatpush.msrb.mxu0 %v549_v14  ;;  %715 = vmatpush.msrb.mxu1 %v583_v15  ;;  %v539_v40 = vld [vmem:[#allocation2 + $0x460] sm:$0xff]  ;;  %v573_v41 = vld [vmem:[#allocation2 + $0x570] sm:$0xff]  ;;  %v494_v14 = vld [vmem:[#allocation2 + $0x2f8] sm:$0xff] }
  0x45   : > { %739 = vmatpush.msrb.mxu2 %v422_v16  ;;  %761 = vmatpush.msrb.mxu3 %v456_v17  ;;  %v537_v44 = vld [vmem:[#allocation2 + $0x450] sm:$0xff]  ;;  %v571_v45 = vld [vmem:[#allocation2 + $0x560] sm:$0xff]  ;;  %v558_v15 = vld [vmem:[#allocation2 + $0x4f8] sm:$0xff] }
  0x46   : > { %694 = vmatpush.msrb.mxu0 %v547_v18  ;;  %716 = vmatpush.msrb.mxu1 %v581_v19  ;;  %v2104_v47 = vld [vmem:[%s2074_s26 + $0x18] sm:$0xff]  ;;  %v535_v50 = vld [vmem:[#allocation2 + $0x440] sm:$0xff]  ;;  %v432_v17 = vld [vmem:[#allocation2 + $0x108] sm:$0xff] }
  0x47   : > { %740 = vmatpush.msrb.mxu2 %v420_v20  ;;  %762 = vmatpush.msrb.mxu3 %v454_v21  ;;  %v569_v51 = vld [vmem:[#allocation2 + $0x550] sm:$0xff]  ;;  %v378_v53 = vrot.slane %v2104_v47, 7  ;;  %v567_v57 = vld [vmem:[#allocation2 + $0x540] sm:$0xff]  ;;  %v2125_v11 = vrot.slane %v2104_v47, 1  ;;  %v492_v19 = vld [vmem:[#allocation2 + $0x2e8] sm:$0xff] }
  0x48   : > { %695 = vmatpush.msrb.mxu0 %v545_v22  ;;  %717 = vmatpush.msrb.mxu1 %v579_v23  ;;  %v533_v56 = vld [vmem:[#allocation2 + $0x430] sm:$0xff]  ;;  %v531_v61 = vld [vmem:[#allocation2 + $0x420] sm:$0xff]  ;;  %v526_v20 = vld [vmem:[#allocation2 + $0x3f8] sm:$0xff] }
  0x49   : > { %741 = vmatpush.msrb.mxu2 %v418_v25  ;;  %763 = vmatpush.msrb.mxu3 %v452_v26  ;;  %v2115_v60 = vsel %vm373_vm0, %v2091_v37, %v378_v53  ;;  %v565_v62 = vld [vmem:[#allocation2 + $0x530] sm:$0xff]  ;;  %v563_v2 = vld [vmem:[#allocation2 + $0x520] sm:$0xff]  ;;  %v2135_v18 = vsel %vm386_vm2, %v390_v10, %v2125_v11  ;;  %v556_v21 = vld [vmem:[#allocation2 + $0x4e8] sm:$0xff] }
  0x4a   : > { %696 = vmatpush.msrb.mxu0 %v543_v27  ;;  %718 = vmatpush.msrb.mxu1 %v577_v28  ;;  %v529_v1 = vld [vmem:[#allocation2 + $0x410] sm:$0xff]  ;;  %v527_v7 = vld [vmem:[#allocation2 + $0x400] sm:$0xff]  ;;  %v590_v22 = vld [vmem:[#allocation2 + $0x5f8] sm:$0xff] }
  0x4b   : > { %742 = vmatpush.msrb.mxu2 %v416_v30  ;;  %764 = vmatpush.msrb.mxu3 %v450_v31  ;;  %v561_v8 = vld [vmem:[#allocation2 + $0x510] sm:$0xff]  ;;  %v559_v16 = vld [vmem:[#allocation2 + $0x500] sm:$0xff]  ;;  %v490_v23 = vld [vmem:[#allocation2 + $0x2d8] sm:$0xff] }
  0x4c   : > { %1691 = vmatmul.msk.f32.vlgmr.msra.gmra.mxu0 %vm2086_vm1, %v2083_v32  ;;  %719 = vmatpush.msrb.mxu1 %v575_v34  ;;  %v524_v25 = vld [vmem:[#allocation2 + $0x3e8] sm:$0xff]  ;;  %v554_v26 = vld [vmem:[#allocation2 + $0x4d8] sm:$0xff] }
  0x4d   : > { %697 = vmatpush.msrb.mxu0 %v541_v35  ;;  %743 = vmatpush.msrb.mxu2 %v414_v36  ;;  %v588_v27 = vld [vmem:[#allocation2 + $0x5e8] sm:$0xff]  ;;  %v522_v30 = vld [vmem:[#allocation2 + $0x3d8] sm:$0xff] }
  0x4e   : > { %765 = vmatpush.msrb.mxu3 %v448_v38  ;;  %1693 = vmatmul.msk.f32.vlgmr.msra.gmra.mxu1 %vm2086_vm1, %v2091_v37  ;;  %v488_v28 = vld [vmem:[#allocation2 + $0x2c8] sm:$0xff]  ;;  %v586_v34 = vld [vmem:[#allocation2 + $0x5d8] sm:$0xff] }
  0x4f   : > { %698 = vmatpush.msrb.mxu0 %v539_v40  ;;  %720 = vmatpush.msrb.mxu1 %v573_v41  ;;  %v552_v31 = vld [vmem:[#allocation2 + $0x4c8] sm:$0xff]  ;;  %v486_v36 = vld [vmem:[#allocation2 + $0x2b8] sm:$0xff] }
  0x50   : > { %744 = vmatpush.msrb.mxu2 %v412_v42  ;;  %766 = vmatpush.msrb.mxu3 %v446_v43  ;;  %v520_v35 = vld [vmem:[#allocation2 + $0x3c8] sm:$0xff]  ;;  %v550_v38 = vld [vmem:[#allocation2 + $0x4b8] sm:$0xff] }
  0x51   : > { %699 = vmatpush.msrb.mxu0 %v537_v44  ;;  %721 = vmatpush.msrb.mxu1 %v571_v45  ;;  %v584_v40 = vld [vmem:[#allocation2 + $0x5c8] sm:$0xff]  ;;  %v518_v42 = vld [vmem:[#allocation2 + $0x3b8] sm:$0xff] }
  0x52   : > { %745 = vmatpush.msrb.mxu2 %v410_v48  ;;  %767 = vmatpush.msrb.mxu3 %v444_v49  ;;  %v484_v41 = vld [vmem:[#allocation2 + $0x2a8] sm:$0xff]  ;;  %v582_v44 = vld [vmem:[#allocation2 + $0x5b8] sm:$0xff] }
  0x53   : > { %659 = vmatmul.f32.vlgmr.msra.gmra.mxu2 %v2077_v24  ;;  %700 = vmatpush.msrb.mxu0 %v535_v50  ;;  %v548_v43 = vld [vmem:[#allocation2 + $0x4a8] sm:$0xff]  ;;  %v482_v45 = vld [vmem:[#allocation2 + $0x298] sm:$0xff] }
  0x54   : > { %722 = vmatpush.msrb.mxu1 %v569_v51  ;;  %746 = vmatpush.msrb.mxu2 %v408_v52  ;;  %v546_v48 = vld [vmem:[#allocation2 + $0x498] sm:$0xff]  ;;  %v580_v49 = vld [vmem:[#allocation2 + $0x5a8] sm:$0xff] }
  0x55   : > { %768 = vmatpush.msrb.mxu3 %v442_v54  ;;  %616 = vmatmul.f32.gmra.mxu0 %v2109_v55  ;;  %v480_v50 = vld [vmem:[#allocation2 + $0x288] sm:$0xff]  ;;  %v514_v51 = vld [vmem:[#allocation2 + $0x398] sm:$0xff] }
  0x56   : > { %682 = vmatmul.f32.vlgmr.msra.gmra.mxu3 %v2080_v29  ;;  %701 = vmatpush.msrb.mxu0 %v533_v56  ;;  %v544_v52 = vld [vmem:[#allocation2 + $0x488] sm:$0xff]  ;;  %v578_v53 = vld [vmem:[#allocation2 + $0x598] sm:$0xff] }
  0x57   : > { %723 = vmatpush.msrb.mxu1 %v567_v57  ;;  %747 = vmatpush.msrb.mxu2 %v406_v58  ;;  %v478_v54 = vld [vmem:[#allocation2 + $0x278] sm:$0xff]  ;;  %v512_v56 = vld [vmem:[#allocation2 + $0x388] sm:$0xff] }
  0x58   : > { %769 = vmatpush.msrb.mxu3 %v440_v59  ;;  %639 = vmatmul.f32.gmra.mxu1 %v2115_v60  ;;  %v542_v57 = vld [vmem:[#allocation2 + $0x478] sm:$0xff]  ;;  %v576_v58 = vld [vmem:[#allocation2 + $0x588] sm:$0xff] }
  0x59   : > { %702 = vmatpush.msrb.mxu0 %v531_v61  ;;  %724 = vmatpush.msrb.mxu1 %v565_v62  ;;  %v476_v59 = vld [vmem:[#allocation2 + $0x268] sm:$0xff]  ;;  %v510_v61 = vld [vmem:[#allocation2 + $0x378] sm:$0xff] }
  0x5a   : > { %748 = vmatpush.msrb.mxu2 %v404_v63  ;;  %770 = vmatpush.msrb.mxu3 %v438_v0  ;;  %v540_v62 = vld [vmem:[#allocation2 + $0x468] sm:$0xff]  ;;  %v574_v63 = vld [vmem:[#allocation2 + $0x578] sm:$0xff] }
  0x5b   : > { %703 = vmatpush.msrb.mxu0 %v529_v1  ;;  %725 = vmatpush.msrb.mxu1 %v563_v2  ;;  %v474_v0 = vld [vmem:[#allocation2 + $0x258] sm:$0xff]  ;;  %v508_v1 = vld [vmem:[#allocation2 + $0x368] sm:$0xff] }
  0x5c   : > { %749 = vmatpush.msrb.mxu2 %v402_v5  ;;  %771 = vmatpush.msrb.mxu3 %v436_v6  ;;  %v538_v2 = vld [vmem:[#allocation2 + $0x458] sm:$0xff]  ;;  %v572_v3 = vld [vmem:[#allocation2 + $0x568] sm:$0xff] }
  0x5d   : > { %662 = vmatmul.f32.gmra.mxu2 %v2094_v39  ;;  %704 = vmatpush.msrb.mxu0 %v527_v7  ;;  %v506_v5 = vld [vmem:[#allocation2 + $0x358] sm:$0xff]  ;;  %v536_v6 = vld [vmem:[#allocation2 + $0x448] sm:$0xff] }
  0x5e   : > { %726 = vmatpush.msrb.mxu1 %v561_v8  ;;  %750 = vmatpush.msrb.mxu2 %v400_v9  ;;  %v570_v7 = vld [vmem:[#allocation2 + $0x558] sm:$0xff]  ;;  %v504_v9 = vld [vmem:[#allocation2 + $0x348] sm:$0xff] }
  0x5f   : > { %772 = vmatpush.msrb.mxu3 %v434_v12  ;;  %705 = vmatmul.f32.vlgmr.msrb.gmra.mxu0 %v2129_v13  ;;  %v470_v8 = vld [vmem:[#allocation2 + $0x238] sm:$0xff]  ;;  %v468_v12 = vld [vmem:[#allocation2 + $0x228] sm:$0xff] }
  0x60   : > { %685 = vmatmul.f32.gmra.mxu3 %v2104_v47  ;;  %781 = vmatpush.msra.mxu0 %v494_v14  ;;  %v534_v10 = vld [vmem:[#allocation2 + $0x438] sm:$0xff] }
  0x61   : > { %827 = vmatpush.msra.mxu2 %v558_v15  ;;  %727 = vmatpush.msrb.mxu1 %v559_v16  ;;  %v502_v14 = vld [vmem:[#allocation2 + $0x338] sm:$0xff]  ;;  %v532_v15 = vld [vmem:[#allocation2 + $0x428] sm:$0xff] }
  0x62   : > { %773 = vmatpush.msrb.mxu3 %v432_v17  ;;  %728 = vmatmul.f32.vlgmr.msrb.gmra.mxu1 %v2135_v18  ;;  %v566_v16 = vld [vmem:[#allocation2 + $0x538] sm:$0xff] }
  0x63   : > { %782 = vmatpush.msra.mxu0 %v492_v19  ;;  %804 = vmatpush.msra.mxu1 %v526_v20  ;;  %v466_v17 = vld [vmem:[#allocation2 + $0x218] sm:$0xff]  ;;  %v500_v19 = vld [vmem:[#allocation2 + $0x328] sm:$0xff] }
  0x64   : > { %828 = vmatpush.msra.mxu2 %v556_v21  ;;  %850 = vmatpush.msra.mxu3 %v590_v22  ;;  %v530_v20 = vld [vmem:[#allocation2 + $0x418] sm:$0xff]  ;;  %v564_v21 = vld [vmem:[#allocation2 + $0x528] sm:$0xff] }
  0x65   : > { %783 = vmatpush.msra.mxu0 %v490_v23  ;;  %805 = vmatpush.msra.mxu1 %v524_v25  ;;  %v464_v22 = vld [vmem:[#allocation2 + $0x208] sm:$0xff]  ;;  %v498_v23 = vld [vmem:[#allocation2 + $0x318] sm:$0xff] }
  0x66   : > { %829 = vmatpush.msra.mxu2 %v554_v26  ;;  %851 = vmatpush.msra.mxu3 %v588_v27  ;;  %v562_v25 = vld [vmem:[#allocation2 + $0x518] sm:$0xff]  ;;  %v496_v26 = vld [vmem:[#allocation2 + $0x308] sm:$0xff] }
  0x67   : > { %784 = vmatpush.msra.mxu0 %v488_v28  ;;  %806 = vmatpush.msra.mxu1 %v522_v30  ;;  %v560_v27 = vld [vmem:[#allocation2 + $0x508] sm:$0xff]  ;;  %v935_v28 = vld [vmem:[#allocation5 + $0xf0] sm:$0xff]  ;;  %v997_v30 = vld [vmem:[#allocation5 + $0x2e0] sm:$0xff] }
  0x68   : > { %830 = vmatpush.msra.mxu2 %v552_v31  ;;  %852 = vmatpush.msra.mxu3 %v586_v34  ;;  %v933_v31 = vld [vmem:[#allocation5 + $0xe0] sm:$0xff]  ;;  %v995_v34 = vld [vmem:[#allocation5 + $0x2d0] sm:$0xff] }
  0x69   : > { %1694 = vmatmul.msk.f32.gmra.mxu0 %vm386_vm2, %v2121_v4  ;;  %807 = vmatpush.msra.mxu1 %v520_v35  ;;  %v931_v35 = vld [vmem:[#allocation5 + $0xd0] sm:$0xff] }
  0x6a   : > { %785 = vmatpush.msra.mxu0 %v486_v36  ;;  %831 = vmatpush.msra.mxu2 %v550_v38  ;;  %v993_v36 = vld [vmem:[#allocation5 + $0x2c0] sm:$0xff] }
  0x6b   : > { %853 = vmatpush.msra.mxu3 %v584_v40  ;;  %1695 = vmatmul.msk.f32.gmra.mxu1 %vm386_vm2, %v2125_v11  ;;  %v989_v38 = vld [vmem:[#allocation5 + $0x2a0] sm:$0xff] }
  0x6c   : > { %786 = vmatpush.msra.mxu0 %v484_v41  ;;  %808 = vmatpush.msra.mxu1 %v518_v42  ;;  %v925_v40 = vld [vmem:[#allocation5 + $0xa0] sm:$0xff]  ;;  %v987_v41 = vld [vmem:[#allocation5 + $0x290] sm:$0xff] }
  0x6d   : > { %832 = vmatpush.msra.mxu2 %v548_v43  ;;  %854 = vmatpush.msra.mxu3 %v582_v44  ;;  %v923_v42 = vld [vmem:[#allocation5 + $0x90] sm:$0xff] }
  0x6e   : > { %787 = vmatpush.msra.mxu0 %v482_v45  ;;  %809 = vmatpush.msra.mxu1 %v516_v46  ;;  %v983_v43 = vld [vmem:[#allocation5 + $0x270] sm:$0xff]  ;;  %v917_v45 = vld [vmem:[#allocation5 + $0x60] sm:$0xff] }
  0x6f   : > { %833 = vmatpush.msra.mxu2 %v546_v48  ;;  %855 = vmatpush.msra.mxu3 %v580_v49  ;;  %v919_v44 = vld [vmem:[#allocation5 + $0x70] sm:$0xff]  ;;  %v977_v48 = vld [vmem:[#allocation5 + $0x240] sm:$0xff] }
  0x70   : > { %788 = vmatpush.msra.mxu0 %v480_v50  ;;  %810 = vmatpush.msra.mxu1 %v514_v51  ;;  %v915_v46 = vld [vmem:[#allocation5 + $0x50] sm:$0xff]  ;;  %v913_v49 = vld [vmem:[#allocation5 + $0x40] sm:$0xff] }
  0x71   : > { %834 = vmatpush.msra.mxu2 %v544_v52  ;;  %856 = vmatpush.msra.mxu3 %v578_v53  ;;  %v975_v50 = vld [vmem:[#allocation5 + $0x230] sm:$0xff]  ;;  %v973_v52 = vld [vmem:[#allocation5 + $0x220] sm:$0xff] }
  0x72   : > { %1697 = vmatmul.msk.f32.vlgmr.msrb.gmra.mxu2 %vm2086_vm1, %v2083_v32  ;;  %789 = vmatpush.msra.mxu0 %v478_v54  ;;  %v472_v32 = vld [vmem:[#allocation2 + $0x248] sm:$0xff]  ;;  %v911_v51 = vld [vmem:[#allocation5 + $0x30] sm:$0xff]  ;;  %v909_v53 = vld [vmem:[#allocation5 + $0x20] sm:$0xff] }
  0x73   : > { %811 = vmatpush.msra.mxu1 %v512_v56  ;;  %835 = vmatpush.msra.mxu2 %v542_v57  ;;  %v971_v54 = vld [vmem:[#allocation5 + $0x210] sm:$0xff]  ;;  %v969_v57 = vld [vmem:[#allocation5 + $0x200] sm:$0xff] }
  0x74   : > { %857 = vmatpush.msra.mxu3 %v576_v58  ;;  %790 = vmatpush.msra.mxu0 %v476_v59  ;;  %v907_v56 = vld [vmem:[#allocation5 + $0x10] sm:$0xff]  ;;  %v905_v58 = vld [vmem:[#allocation5] sm:$0xff]  ;;  %v936_v59 = vld [vmem:[#allocation5 + $0xf8] sm:$0xff] }
  0x75   : > { %1699 = vmatmul.msk.f32.vlgmr.msrb.gmra.mxu3 %vm2086_vm1, %v2091_v37  ;;  %812 = vmatpush.msra.mxu1 %v510_v61  ;;  %v568_v37 = vld [vmem:[#allocation2 + $0x548] sm:$0xff]  ;;  %v1063_v61 = vld [vmem:[#allocation5 + $0x4f0] sm:$0xff] }
  0x76   : > { %836 = vmatpush.msra.mxu2 %v540_v62  ;;  %858 = vmatpush.msra.mxu3 %v574_v63  ;;  %v934_v62 = vld [vmem:[#allocation5 + $0xe8] sm:$0xff]  ;;  %v1061_v63 = vld [vmem:[#allocation5 + $0x4e0] sm:$0xff] }
  0x77   : > { %791 = vmatpush.msra.mxu0 %v474_v0  ;;  %813 = vmatpush.msra.mxu1 %v508_v1  ;;  %v932_v0 = vld [vmem:[#allocation5 + $0xd8] sm:$0xff]  ;;  %v930_v1 = vld [vmem:[#allocation5 + $0xc8] sm:$0xff] }
  0x78   : > { %837 = vmatpush.msra.mxu2 %v538_v2  ;;  %859 = vmatpush.msra.mxu3 %v572_v3  ;;  %v1059_v2 = vld [vmem:[#allocation5 + $0x4d0] sm:$0xff]  ;;  %v1029_v3 = vld [vmem:[#allocation5 + $0x3e0] sm:$0xff] }
  0x79   : > { %792 = vmatpush.msra.mxu0 %v472_v32  ;;  %814 = vmatpush.msra.mxu1 %v506_v5  ;;  %v928_v32 = vld [vmem:[#allocation5 + $0xb8] sm:$0xff]  ;;  %v967_v5 = vld [vmem:[#allocation5 + $0x1f0] sm:$0xff] }
  0x7a   : > { %838 = vmatpush.msra.mxu2 %v536_v6  ;;  %860 = vmatpush.msra.mxu3 %v570_v7  ;;  %v1057_v6 = vld [vmem:[#allocation5 + $0x4c0] sm:$0xff]  ;;  %v1027_v7 = vld [vmem:[#allocation5 + $0x3d0] sm:$0xff] }
  0x7b   : > { %754 = vmatmul.f32.gmra.mxu2 %v2109_v55  ;;  %793 = vmatpush.msra.mxu0 %v470_v8  ;;  %v528_v55 = vld [vmem:[#allocation2 + $0x408] sm:$0xff] }
  0x7c   : > { %815 = vmatpush.msra.mxu1 %v504_v9  ;;  %839 = vmatpush.msra.mxu2 %v534_v10  ;;  %v926_v8 = vld [vmem:[#allocation5 + $0xa8] sm:$0xff]  ;;  %v965_v9 = vld [vmem:[#allocation5 + $0x1e0] sm:$0xff]  ;;  %v1055_v10 = vld [vmem:[#allocation5 + $0x4b0] sm:$0xff] }
  0x7d   : > { %861 = vmatpush.msra.mxu3 %v568_v37  ;;  %794 = vmatpush.msra.mxu0 %v468_v12  ;;  %v1025_v37 = vld [vmem:[#allocation5 + $0x3c0] sm:$0xff]  ;;  %v963_v12 = vld [vmem:[#allocation5 + $0x1d0] sm:$0xff] }
  0x7e   : > { %777 = vmatmul.f32.gmra.mxu3 %v2115_v60  ;;  %816 = vmatpush.msra.mxu1 %v502_v14  ;;  %v999_v60 = vld [vmem:[#allocation5 + $0x2f0] sm:$0xff]  ;;  %v924_v14 = vld [vmem:[#allocation5 + $0x98] sm:$0xff] }
  0x7f   : > { %840 = vmatpush.msra.mxu2 %v532_v15  ;;  %862 = vmatpush.msra.mxu3 %v566_v16  ;;  %v1053_v15 = vld [vmem:[#allocation5 + $0x4a0] sm:$0xff]  ;;  %v1023_v16 = vld [vmem:[#allocation5 + $0x3b0] sm:$0xff] }
  0x80   : > { %795 = vmatpush.msra.mxu0 %v466_v17  ;;  %817 = vmatpush.msra.mxu1 %v500_v19  ;;  %v922_v17 = vld [vmem:[#allocation5 + $0x88] sm:$0xff]  ;;  %v961_v19 = vld [vmem:[#allocation5 + $0x1c0] sm:$0xff] }
  0x81   : > { %841 = vmatpush.msra.mxu2 %v530_v20  ;;  %863 = vmatpush.msra.mxu3 %v564_v21  ;;  %v1051_v20 = vld [vmem:[#allocation5 + $0x490] sm:$0xff]  ;;  %v1021_v21 = vld [vmem:[#allocation5 + $0x3a0] sm:$0xff] }
  0x82   : > { %796 = vmatpush.msra.mxu0 %v464_v22  ;;  %818 = vmatpush.msra.mxu1 %v498_v23  ;;  %v920_v22 = vld [vmem:[#allocation5 + $0x78] sm:$0xff]  ;;  %v959_v23 = vld [vmem:[#allocation5 + $0x1b0] sm:$0xff] }
  0x83   : > { %842 = vmatpush.msra.mxu2 %v528_v55  ;;  %864 = vmatpush.msra.mxu3 %v562_v25  ;;  %v1049_v55 = vld [vmem:[#allocation5 + $0x480] sm:$0xff]  ;;  %v1019_v25 = vld [vmem:[#allocation5 + $0x390] sm:$0xff] }
  0x84   : > { %797 = vmatmul.f32.vlgmr.msra.gmra.mxu0 %v2077_v24  ;;  %843 = vmatmul.f32.vlgmr.msra.gmra.mxu2 %v2129_v13  ;;  %v929_v24 = vld [vmem:[#allocation5 + $0xc0] sm:$0xff]  ;;  %v927_v13 = vld [vmem:[#allocation5 + $0xb0] sm:$0xff] }
  0x85   : > { %819 = vmatpush.msra.mxu1 %v496_v26  ;;  %865 = vmatpush.msra.mxu3 %v560_v27  ;;  %v918_v26 = vld [vmem:[#allocation5 + $0x68] sm:$0xff]  ;;  %v957_v27 = vld [vmem:[#allocation5 + $0x1a0] sm:$0xff] }
  0x86   : > { %820 = vmatmul.f32.vlgmr.msra.gmra.mxu1 %v2080_v29  ;;  %866 = vmatmul.f32.vlgmr.msra.gmra.mxu3 %v2135_v18  ;;  %v991_v29 = vld [vmem:[#allocation5 + $0x2b0] sm:$0xff] }
  0x87   : > { %1149 = vmatpush.msrb.mxu2 %v999_v60  ;;  %1103 = vmatpush.msrb.mxu0 %v935_v28  ;;  %v1031_v18 = vld [vmem:[#allocation5 + $0x3f0] sm:$0xff]  ;;  %v1017_v28 = vld [vmem:[#allocation5 + $0x380] sm:$0xff] }
  0x88   : > { %1172 = vmatpush.msrb.mxu3 %v1031_v18  ;;  %1126 = vmatpush.msrb.mxu1 %v967_v5  ;;  %v1047_v60 = vld [vmem:[#allocation5 + $0x470] sm:$0xff]  ;;  %v912_v18 = vld [vmem:[#allocation5 + $0x38] sm:$0xff] }
  0x89   : > { %1150 = vmatpush.msrb.mxu2 %v997_v30  ;;  %1104 = vmatpush.msrb.mxu0 %v933_v31  ;;  %v916_v30 = vld [vmem:[#allocation5 + $0x58] sm:$0xff]  ;;  %v955_v31 = vld [vmem:[#allocation5 + $0x190] sm:$0xff] }
  0x8a   : > { %1173 = vmatpush.msrb.mxu3 %v1029_v3  ;;  %1127 = vmatpush.msrb.mxu1 %v965_v9  ;;  %v1095_v3 = vld [vmem:[#allocation5 + $0x5f0] sm:$0xff] }
  0x8b   : > { %1151 = vmatpush.msrb.mxu2 %v995_v34  ;;  %1105 = vmatpush.msrb.mxu0 %v931_v35  ;;  %v1045_v34 = vld [vmem:[#allocation5 + $0x460] sm:$0xff]  ;;  %v1015_v35 = vld [vmem:[#allocation5 + $0x370] sm:$0xff] }
  0x8c   : > { %800 = vmatmul.f32.gmra.mxu0 %v2094_v39  ;;  %1700 = vmatmul.msk.f32.gmra.mxu2 %vm386_vm2, %v2121_v4  ;;  %v985_v39 = vld [vmem:[#allocation5 + $0x280] sm:$0xff] }
  0x8d   : > { %1152 = vmatpush.msrb.mxu2 %v993_v36  ;;  %1106 = vmatpush.msrb.mxu0 %v929_v24  ;;  %v921_v4 = vld [vmem:[#allocation5 + $0x80] sm:$0xff]  ;;  %v914_v36 = vld [vmem:[#allocation5 + $0x48] sm:$0xff] }
  0x8e   : > { %823 = vmatmul.f32.gmra.mxu1 %v2104_v47  ;;  %1701 = vmatmul.msk.f32.gmra.mxu3 %vm386_vm2, %v2125_v11  ;;  %v981_v47 = vld [vmem:[#allocation5 + $0x260] sm:$0xff]  ;;  %v979_v11 = vld [vmem:[#allocation5 + $0x250] sm:$0xff] }
  0x8f   : > { %1153 = vmatpush.msrb.mxu2 %v991_v29  ;;  %1107 = vmatpush.msrb.mxu0 %v927_v13  ;;  %v953_v24 = vld [vmem:[#allocation5 + $0x180] sm:$0xff]  ;;  %v1043_v29 = vld [vmem:[#allocation5 + $0x450] sm:$0xff] }
  0x90   : > { %1174 = vmatpush.msrb.mxu3 %v1027_v7  ;;  %1128 = vmatpush.msrb.mxu1 %v963_v12  ;;  %v1013_v13 = vld [vmem:[#allocation5 + $0x360] sm:$0xff]  ;;  %v960_v12 = vld [vmem:[#allocation5 + $0x1b8] sm:$0xff] }
  0x91   : > { %1154 = vmatpush.msrb.mxu2 %v989_v38  ;;  %1108 = vmatpush.msrb.mxu0 %v925_v40  ;;  %v951_v38 = vld [vmem:[#allocation5 + $0x170] sm:$0xff]  ;;  %v1041_v40 = vld [vmem:[#allocation5 + $0x440] sm:$0xff] }
  0x92   : > { %1175 = vmatpush.msrb.mxu3 %v1025_v37  ;;  %1129 = vmatpush.msrb.mxu1 %v961_v19  ;;  %v1091_v37 = vld [vmem:[#allocation5 + $0x5d0] sm:$0xff]  ;;  %v958_v19 = vld [vmem:[#allocation5 + $0x1a8] sm:$0xff] }
  0x93   : > { %1155 = vmatpush.msrb.mxu2 %v987_v41  ;;  %1109 = vmatpush.msrb.mxu0 %v923_v42  ;;  %v1011_v41 = vld [vmem:[#allocation5 + $0x350] sm:$0xff]  ;;  %v910_v42 = vld [vmem:[#allocation5 + $0x28] sm:$0xff] }
  0x94   : > { %1176 = vmatpush.msrb.mxu3 %v1023_v16  ;;  %1130 = vmatpush.msrb.mxu1 %v959_v23  ;;  %v1085_v23 = vld [vmem:[#allocation5 + $0x5a0] sm:$0xff] }
  0x95   : > { %1156 = vmatpush.msrb.mxu2 %v985_v39  ;;  %1110 = vmatpush.msrb.mxu0 %v921_v4  ;;  %v949_v39 = vld [vmem:[#allocation5 + $0x160] sm:$0xff]  ;;  %v1039_v4 = vld [vmem:[#allocation5 + $0x430] sm:$0xff] }
  0x96   : > { %1177 = vmatpush.msrb.mxu3 %v1021_v21  ;;  %1131 = vmatpush.msrb.mxu1 %v957_v27 }
  0x97   : > { %1157 = vmatpush.msrb.mxu2 %v983_v43  ;;  %1111 = vmatpush.msrb.mxu0 %v919_v44  ;;  %v1009_v43 = vld [vmem:[#allocation5 + $0x340] sm:$0xff]  ;;  %v908_v44 = vld [vmem:[#allocation5 + $0x18] sm:$0xff] }
  0x98   : > { %1178 = vmatpush.msrb.mxu3 %v1019_v25  ;;  %1132 = vmatpush.msrb.mxu1 %v955_v31 }
  0x99   : > { %1158 = vmatpush.msrb.mxu2 %v981_v47  ;;  %1112 = vmatpush.msrb.mxu0 %v917_v45  ;;  %v947_v47 = vld [vmem:[#allocation5 + $0x150] sm:$0xff]  ;;  %v1037_v45 = vld [vmem:[#allocation5 + $0x420] sm:$0xff] }
  0x9a   : > { %1179 = vmatpush.msrb.mxu3 %v1017_v28  ;;  %1133 = vmatpush.msrb.mxu1 %v953_v24  ;;  %v950_v24 = vld [vmem:[#allocation5 + $0x168] sm:$0xff] }
  0x9b   : > { %1159 = vmatpush.msrb.mxu2 %v979_v11  ;;  %1113 = vmatpush.msrb.mxu0 %v915_v46  ;;  %v1007_v11 = vld [vmem:[#allocation5 + $0x330] sm:$0xff]  ;;  %v906_v46 = vld [vmem:[#allocation5 + $0x8] sm:$0xff] }
  0x9c   : > { %1180 = vmatpush.msrb.mxu3 %v1015_v35  ;;  %1134 = vmatpush.msrb.mxu1 %v951_v38  ;;  %v1081_v35 = vld [vmem:[#allocation5 + $0x580] sm:$0xff] }
  0x9d   : > { %1160 = vmatpush.msrb.mxu2 %v977_v48  ;;  %1114 = vmatpush.msrb.mxu0 %v913_v49  ;;  %v945_v48 = vld [vmem:[#allocation5 + $0x140] sm:$0xff]  ;;  %v1035_v49 = vld [vmem:[#allocation5 + $0x410] sm:$0xff] }
  0x9e   : > { %1181 = vmatpush.msrb.mxu3 %v1013_v13  ;;  %1135 = vmatpush.msrb.mxu1 %v949_v39  ;;  %v1064_v13 = vld [vmem:[#allocation5 + $0x4f8] sm:$0xff] }
  0x9f   : > { %1161 = vmatpush.msrb.mxu2 %v975_v50  ;;  %1115 = vmatpush.msrb.mxu0 %v911_v51  ;;  %v2164_v50 = vld [vmem:[%s2388_s2] sm:$0x3]  ;;  %v1005_v51 = vld [vmem:[#allocation5 + $0x320] sm:$0xff] }
  0xa0   : > { %1182 = vmatpush.msrb.mxu3 %v1011_v41  ;;  %1136 = vmatpush.msrb.mxu1 %v947_v47  ;;  %v948_v41 = vld [vmem:[#allocation5 + $0x158] sm:$0xff] }
  0xa1   : > { %1162 = vmatpush.msrb.mxu2 %v973_v52  ;;  %1116 = vmatpush.msrb.mxu0 %v909_v53  ;;  %v593_v53 = vperm.slane %v2164_v50, 0 }
  0xa2   : > { %1183 = vmatpush.msrb.mxu3 %v1009_v43  ;;  %1137 = vmatpush.msrb.mxu1 %v945_v48  ;;  %v1077_v43 = vld [vmem:[#allocation5 + $0x560] sm:$0xff] }
  0xa3   : > { %1163 = vmatpush.msrb.mxu2 %v971_v54  ;;  %1117 = vmatpush.msrb.mxu0 %v907_v56  ;;  %v943_v56 = vld [vmem:[#allocation5 + $0x130] sm:$0xff] }
  0xa4   : > { %1184 = vmatpush.msrb.mxu3 %v1007_v11  ;;  %1138 = vmatpush.msrb.mxu1 %v943_v56  ;;  %v998_v11 = vld [vmem:[#allocation5 + $0x2e8] sm:$0xff] }
  0xa5   : > { %1164 = vmatpush.msrb.mxu2 %v969_v57  ;;  %1118 = vmatpush.msrb.mxu0 %v905_v58  ;;  %v1033_v57 = vld [vmem:[#allocation5 + $0x400] sm:$0xff]  ;;  %v1003_v58 = vld [vmem:[#allocation5 + $0x310] sm:$0xff] }
  0xa6   : > { %1185 = vmatpush.msrb.mxu3 %v1005_v51 }
  0xa7   : > { %1241 = vmatpush.msra.mxu2 %v936_v59  ;;  %1195 = vmatpush.msra.mxu0 %v1063_v61  ;;  %v941_v59 = vld [vmem:[#allocation5 + $0x120] sm:$0xff] }
  0xa8   : > { %1186 = vmatpush.msrb.mxu3 %v1003_v58  ;;  %v1001_v61 = vld [vmem:[#allocation5 + $0x300] sm:$0xff]  ;;  %1139 = vmatpush.msrb.mxu1 %v941_v59  ;;  %v994_v58 = vld [vmem:[#allocation5 + $0x2c8] sm:$0xff]  ;;  %v1071_v59 = vld [vmem:[#allocation5 + $0x530] sm:$0xff] }
  0xa9   : > { %1242 = vmatpush.msra.mxu2 %v934_v62  ;;  %1196 = vmatpush.msra.mxu0 %v1061_v63  ;;  %v939_v62 = vld [vmem:[#allocation5 + $0x110] sm:$0xff]  ;;  %v968_v63 = vld [vmem:[#allocation5 + $0x1f8] sm:$0xff] }
  0xaa   : > { %1187 = vmatpush.msrb.mxu3 %v1001_v61  ;;  %1140 = vmatpush.msrb.mxu1 %v939_v62  ;;  %v1056_v62 = vld [vmem:[#allocation5 + $0x4b8] sm:$0xff] }
  0xab   : > { %1243 = vmatpush.msra.mxu2 %v932_v0  ;;  %1197 = vmatpush.msra.mxu0 %v1059_v2  ;;  %v966_v2 = vld [vmem:[#allocation5 + $0x1e8] sm:$0xff] }
  0xac   : > { %1264 = vmatpush.msra.mxu3 %v968_v63  ;;  %v940_v63 = vld [vmem:[#allocation5 + $0x118] sm:$0xff] }
  0xad   : > { %1244 = vmatpush.msra.mxu2 %v930_v1  ;;  %1198 = vmatpush.msra.mxu0 %v1057_v6  ;;  %v937_v1 = vld [vmem:[#allocation5 + $0x100] sm:$0xff] }
  0xae   : > { %1141 = vmatpush.msrb.mxu1 %v937_v1  ;;  %1265 = vmatpush.msra.mxu3 %v966_v2  ;;  %v1093_v6 = vld [vmem:[#allocation5 + $0x5e0] sm:$0xff] }
  0xaf   : > { %1245 = vmatpush.msra.mxu2 %v928_v32  ;;  %1199 = vmatpush.msra.mxu0 %v1055_v10  ;;  %v964_v32 = vld [vmem:[#allocation5 + $0x1d8] sm:$0xff]  ;;  %v1069_v1 = vld [vmem:[#allocation5 + $0x520] sm:$0xff] }
  0xb0   : > { %1218 = vmatpush.msra.mxu1 %v1095_v3  ;;  %1266 = vmatpush.msra.mxu3 %v964_v32  ;;  %v1054_v3 = vld [vmem:[#allocation5 + $0x4a8] sm:$0xff] }
  0xb1   : > { %1246 = vmatpush.msra.mxu2 %v926_v8  ;;  %1200 = vmatpush.msra.mxu0 %v1053_v15  ;;  %v962_v8 = vld [vmem:[#allocation5 + $0x1c8] sm:$0xff]  ;;  %v1089_v15 = vld [vmem:[#allocation5 + $0x5c0] sm:$0xff] }
  0xb2   : > { %1219 = vmatpush.msra.mxu1 %v1093_v6  ;;  %1267 = vmatpush.msra.mxu3 %v962_v8  ;;  %v938_v32 = vld [vmem:[#allocation5 + $0x108] sm:$0xff]  ;;  %v1067_v6 = vld [vmem:[#allocation5 + $0x510] sm:$0xff]  ;;  %v1052_v8 = vld [vmem:[#allocation5 + $0x498] sm:$0xff] }
  0xb3   : > { %1247 = vmatpush.msra.mxu2 %v924_v14  ;;  %1201 = vmatpush.msra.mxu0 %v1051_v20  ;;  %v1087_v20 = vld [vmem:[#allocation5 + $0x5b0] sm:$0xff] }
  0xb4   : > { %1220 = vmatpush.msra.mxu1 %v1091_v37  ;;  %1268 = vmatpush.msra.mxu3 %v960_v12  ;;  %v1050_v37 = vld [vmem:[#allocation5 + $0x488] sm:$0xff] }
  0xb5   : > { %1248 = vmatpush.msra.mxu2 %v922_v17  ;;  %1202 = vmatpush.msra.mxu0 %v1049_v55  ;;  %v954_v55 = vld [vmem:[#allocation5 + $0x188] sm:$0xff] }
  0xb6   : > { %1221 = vmatpush.msra.mxu1 %v1089_v15  ;;  %1269 = vmatpush.msra.mxu3 %v958_v19  ;;  %v986_v12 = vld [vmem:[#allocation5 + $0x288] sm:$0xff] }
  0xb7   : > { %1249 = vmatpush.msra.mxu2 %v920_v22  ;;  %1203 = vmatpush.msra.mxu0 %v1047_v60  ;;  %v956_v22 = vld [vmem:[#allocation5 + $0x198] sm:$0xff]  ;;  %v1083_v60 = vld [vmem:[#allocation5 + $0x590] sm:$0xff] }
  0xb8   : > { %1222 = vmatpush.msra.mxu1 %v1087_v20  ;;  %1270 = vmatpush.msra.mxu3 %v956_v22  ;;  %v1046_v20 = vld [vmem:[#allocation5 + $0x468] sm:$0xff] }
  0xb9   : > { %1250 = vmatpush.msra.mxu2 %v918_v26  ;;  %1204 = vmatpush.msra.mxu0 %v1045_v34 }
  0xba   : > { %1223 = vmatpush.msra.mxu1 %v1085_v23  ;;  %1271 = vmatpush.msra.mxu3 %v954_v55  ;;  %v1044_v23 = vld [vmem:[#allocation5 + $0x458] sm:$0xff]  ;;  %v594_v55 = vperm.slane %v2164_v50, 1 }
  0xbb   : > { %1251 = vmatpush.msra.mxu2 %v916_v30  ;;  %1205 = vmatpush.msra.mxu0 %v1043_v29  ;;  %v952_v30 = vld [vmem:[#allocation5 + $0x178] sm:$0xff] }
  0xbc   : > { %1224 = vmatpush.msra.mxu1 %v1083_v60  ;;  %1272 = vmatpush.msra.mxu3 %v952_v30  ;;  %v978_v60 = vld [vmem:[#allocation5 + $0x248] sm:$0xff]  ;;  %v1036_v50 = vld [vmem:[#allocation5 + $0x418] sm:$0xff] }
  0xbd   : > { %1252 = vmatpush.msra.mxu2 %v914_v36  ;;  %1206 = vmatpush.msra.mxu0 %v1041_v40  ;;  %v1062_v40 = vld [vmem:[#allocation5 + $0x4e8] sm:$0xff] }
  0xbe   : > { %1225 = vmatpush.msra.mxu1 %v1081_v35  ;;  %1273 = vmatpush.msra.mxu3 %v950_v24 }
  0xbf   : > { %1253 = vmatpush.msra.mxu2 %v912_v18  ;;  %1207 = vmatpush.msra.mxu0 %v1039_v4  ;;  %v1079_v18 = vld [vmem:[#allocation5 + $0x570] sm:$0xff]  ;;  %v1000_v4 = vld [vmem:[#allocation5 + $0x2f8] sm:$0xff] }
  0xc0   : > { %1226 = vmatpush.msra.mxu1 %v1079_v18  ;;  %1274 = vmatpush.msra.mxu3 %v948_v41 }
  0xc1   : > { %1254 = vmatpush.msra.mxu2 %v910_v42  ;;  %1208 = vmatpush.msra.mxu0 %v1037_v45  ;;  %v1060_v45 = vld [vmem:[#allocation5 + $0x4d8] sm:$0xff] }
  0xc2   : > { %1227 = vmatpush.msra.mxu1 %v1077_v43 }
  0xc3   : > { %1255 = vmatpush.msra.mxu2 %v908_v44  ;;  %1209 = vmatpush.msra.mxu0 %v1035_v49  ;;  %v946_v44 = vld [vmem:[#allocation5 + $0x148] sm:$0xff]  ;;  %v944_v49 = vld [vmem:[#allocation5 + $0x138] sm:$0xff] }
  0xc4   : > { %1275 = vmatpush.msra.mxu3 %v946_v44 }
  0xc5   : > { %1256 = vmatpush.msra.mxu2 %v906_v46  ;;  %1210 = vmatpush.msra.mxu0 %v1033_v57  ;;  %v1075_v46 = vld [vmem:[#allocation5 + $0x550] sm:$0xff]  ;;  %v942_v57 = vld [vmem:[#allocation5 + $0x128] sm:$0xff] }
  0xc6   : > { %1228 = vmatpush.msra.mxu1 %v1075_v46  ;;  %1276 = vmatpush.msra.mxu3 %v944_v49 }
  0xc8   : > { %1277 = vmatpush.msra.mxu3 %v942_v57  ;;  %v1094_v57 = vld [vmem:[#allocation5 + $0x5e8] sm:$0xff] }
  0xc9   : > { %v614_v52 = vpop.f32.mrf.mxu0 }
  0xca   : > { %v615_v0 = vadd.f32 %v614_v52, %v593_v53  ;;  %v1058_v52 = vld [vmem:[#allocation5 + $0x4c8] sm:$0xff]  ;;  %1278 = vmatpush.msra.mxu3 %v940_v63 }
  0xcb   : > { %v637_v54 = vpop.f32.mrf.mxu1  ;;  %v1030_v63 = vld [vmem:[#allocation5 + $0x3e8] sm:$0xff] }
  0xcc   : > { %v638_v7 = vadd.f32 %v637_v54, %v615_v0  ;;  %v1073_v54 = vld [vmem:[#allocation5 + $0x540] sm:$0xff]  ;;  %v992_v0 = vld [vmem:[#allocation5 + $0x2b8] sm:$0xff]  ;;  %1279 = vmatpush.msra.mxu3 %v938_v32 }
  0xcd   : > { %1229 = vmatpush.msra.mxu1 %v1073_v54 }
  0xcf   : > { %1230 = vmatpush.msra.mxu1 %v1071_v59 }
  0xd1   : > { %1231 = vmatpush.msra.mxu1 %v1069_v1 }
  0xd2   : > { %v617_v5 = vpop.f32.mrf.mxu0 }
  0xd3   : > { %v618_v16 = vadd.f32 %v617_v5, %v593_v53  ;;  %v996_v53 = vld [vmem:[#allocation5 + $0x2d8] sm:$0xff]  ;;  %v990_v5 = vld [vmem:[#allocation5 + $0x2a8] sm:$0xff]  ;;  %1232 = vmatpush.msra.mxu1 %v1067_v6 }
  0xd4   : > { %v1026_v6 = vld [vmem:[#allocation5 + $0x3c8] sm:$0xff] }
  0xd5   : > { %v640_v9 = vpop.f32.mrf.mxu1 }
  0xd6   : > { %v660_v10 = vpop.f32.mrf.mxu2  ;;  %v641_v26 = vadd.f32 %v640_v9, %v618_v16  ;;  %v988_v9 = vld [vmem:[#allocation5 + $0x298] sm:$0xff] }
  0xd7   : > { %v661_v14 = vadd.f32 %v660_v10, %v638_v7  ;;  %v1065_v10 = vld [vmem:[#allocation5 + $0x500] sm:$0xff] }
  0xd8   : > { %1233 = vmatpush.msra.mxu1 %v1065_v10  ;;  %v1084_v10 = vld [vmem:[#allocation5 + $0x598] sm:$0xff] }
  0xd9   : > { %v683_v17 = vpop.f32.mrf.mxu3 }
  0xda   : > { %v684_v21 = vadd.f32 %v683_v17, %v661_v14  ;;  %v1048_v14 = vld [vmem:[#allocation5 + $0x478] sm:$0xff] }
  0xdb   : > { %v984_v17 = vld [vmem:[#allocation5 + $0x278] sm:$0xff] }
  0xdc   : > { %v706_v25 = vpop.f32.mrf.mxu0 }
  0xdd   : > { %v707_v27 = vadd.f32 %v706_v25, %v684_v21  ;;  %v982_v21 = vld [vmem:[#allocation5 + $0x268] sm:$0xff] }
  0xdf   : > { %v729_v28 = vpop.f32.mrf.mxu1 }
  0xe0   : > { %v730_v31 = vadd.f32 %v729_v28, %v707_v27  ;;  %v663_v34 = vpop.f32.mrf.mxu2  ;;  %v1042_v27 = vld [vmem:[#allocation5 + $0x448] sm:$0xff]  ;;  %v1040_v28 = vld [vmem:[#allocation5 + $0x438] sm:$0xff] }
  0xe1   : > { %v664_v36 = vadd.f32 %v663_v34, %v641_v26  ;;  %v980_v26 = vld [vmem:[#allocation5 + $0x258] sm:$0xff]  ;;  %v1038_v34 = vld [vmem:[#allocation5 + $0x428] sm:$0xff] }
  0xe2   : > { %v2167_v29 = vmax.f32 %v730_v31, 0.0  ;;  %v976_v31 = vld [vmem:[#allocation5 + $0x238] sm:$0xff] }
  0xe3   : > { %v686_v38 = vpop.f32.mrf.mxu3 }
  0xe4   : > { %v2170_v42 = vrot.slane %v2167_v29, 7  ;;  %v687_v39 = vadd.f32 %v686_v38, %v664_v36  ;;  %1165 = vmatmul.f32.vlgmr.msrb.gmra.mxu2 %v2167_v29  ;;  %v893_v15 = vrot.slane %v2167_v29, 1  ;;  %v974_v36 = vld [vmem:[#allocation5 + $0x228] sm:$0xff] }
  0xe5   : > { %1333 = vmatpush.msrb.mxu2 %v1064_v13  ;;  %v972_v13 = vld [vmem:[#allocation5 + $0x218] sm:$0xff] }
  0xe6   : > { %v709_v47 = vpop.f32.mrf.mxu0  ;;  %1703 = vmatmul.msk.f32.vlgmr.msrb.gmra.mxu0 %vm2086_vm1, %v2170_v42 }
  0xe7   : > { %v710_v48 = vadd.f32 %v709_v47, %v687_v39  ;;  %1334 = vmatpush.msrb.mxu2 %v1062_v40  ;;  %1287 = vmatpush.msrb.mxu0 %v1000_v4  ;;  %v1034_v40 = vld [vmem:[#allocation5 + $0x408] sm:$0xff] }
  0xe8   : > { %v732_v51 = vpop.f32.mrf.mxu1 }
  0xe9   : > { %v733_v56 = vadd.f32 %v732_v51, %v710_v48  ;;  %1335 = vmatpush.msrb.mxu2 %v1060_v45  ;;  %1288 = vmatpush.msrb.mxu0 %v998_v11 }
  0xeb   : > { %v2176_v61 = vmax.f32 %v733_v56, 0.0  ;;  %1336 = vmatpush.msrb.mxu2 %v1058_v52  ;;  %1289 = vmatpush.msrb.mxu0 %v996_v53  ;;  %v1096_v53 = vld [vmem:[#allocation5 + $0x5f8] sm:$0xff] }
  0xed   : > { %1168 = vmatmul.f32.gmra.mxu2 %v2176_v61  ;;  %1290 = vmatpush.msrb.mxu0 %v994_v58  ;;  %v883_v2 = vrot.slane %v2176_v61, 7  ;;  %v2184_v16 = vrot.slane %v2176_v61, 1  ;;  %v1032_v58 = vld [vmem:[#allocation5 + $0x3f8] sm:$0xff] }
  0xee   : > { %1337 = vmatpush.msrb.mxu2 %v1056_v62  ;;  %v1092_v62 = vld [vmem:[#allocation5 + $0x5d8] sm:$0xff] }
  0xef   : > { %v884_v7 = vsel %vm373_vm0, %v2170_v42, %v883_v2  ;;  %1291 = vmatpush.msrb.mxu0 %v992_v0  ;;  %v895_v22 = vsel %vm386_vm2, %v893_v15, %v2184_v16  ;;  %v1090_v2 = vld [vmem:[#allocation5 + $0x5c8] sm:$0xff]  ;;  %v1080_v15 = vld [vmem:[#allocation5 + $0x578] sm:$0xff] }
  0xf0   : > { %1122 = vmatmul.f32.gmra.mxu0 %v884_v7  ;;  %1338 = vmatpush.msrb.mxu2 %v1054_v3  ;;  %v1028_v3 = vld [vmem:[#allocation5 + $0x3d8] sm:$0xff] }
  0xf1   : > { %1292 = vmatpush.msrb.mxu0 %v990_v5  ;;  %v1088_v5 = vld [vmem:[#allocation5 + $0x5b8] sm:$0xff] }
  0xf2   : > { %1339 = vmatpush.msrb.mxu2 %v1052_v8  ;;  %v1024_v8 = vld [vmem:[#allocation5 + $0x3b8] sm:$0xff] }
  0xf3   : > { %1293 = vmatpush.msrb.mxu0 %v988_v9 }
  0xf4   : > { %1340 = vmatpush.msrb.mxu2 %v1050_v37  ;;  %v1022_v37 = vld [vmem:[#allocation5 + $0x3a8] sm:$0xff] }
  0xf5   : > { %v752_v19 = vpop.f32.mrf.mxu2  ;;  %1709 = vmatmul.msk.f32.vlgmr.msra.gmra.mxu2 %vm2086_vm1, %v2170_v42  ;;  %1294 = vmatpush.msrb.mxu0 %v986_v12  ;;  %v970_v42 = vld [vmem:[#allocation5 + $0x208] sm:$0xff] }
  0xf6   : > { %1341 = vmatpush.msrb.mxu2 %v1048_v14  ;;  %v753_v30 = vadd.f32 %v752_v19, %v594_v55  ;;  %v1082_v12 = vld [vmem:[#allocation5 + $0x588] sm:$0xff]  ;;  %v1020_v14 = vld [vmem:[#allocation5 + $0x398] sm:$0xff] }
  0xf7   : > { %1295 = vmatpush.msrb.mxu0 %v984_v17  ;;  %v1018_v17 = vld [vmem:[#allocation5 + $0x388] sm:$0xff] }
  0xf8   : > { %v775_v25 = vpop.f32.mrf.mxu3  ;;  %1211 = vmatmul.f32.vlgmr.msra.gmra.mxu0 %v895_v22  ;;  %1342 = vmatpush.msrb.mxu2 %v1046_v20  ;;  %v1078_v20 = vld [vmem:[#allocation5 + $0x568] sm:$0xff] }
  0xf9   : > { %1296 = vmatpush.msrb.mxu0 %v982_v21  ;;  %v776_v24 = vadd.f32 %v775_v25, %v753_v30  ;;  %v1016_v21 = vld [vmem:[#allocation5 + $0x378] sm:$0xff]  ;;  %v1074_v25 = vld [vmem:[#allocation5 + $0x548] sm:$0xff] }
  0xfa   : > { %1343 = vmatpush.msrb.mxu2 %v1044_v23  ;;  %v1076_v23 = vld [vmem:[#allocation5 + $0x558] sm:$0xff] }
  0xfb   : > { %1297 = vmatpush.msrb.mxu0 %v980_v26  ;;  %v1012_v26 = vld [vmem:[#allocation5 + $0x358] sm:$0xff] }
  0xfc   : > { %1344 = vmatpush.msrb.mxu2 %v1042_v27  ;;  %v1010_v27 = vld [vmem:[#allocation5 + $0x348] sm:$0xff]  ;;  %v1068_v30 = vld [vmem:[#allocation5 + $0x518] sm:$0xff] }
  0xfd   : > { %1260 = vmatmul.f32.gmra.mxu2 %v884_v7  ;;  %1298 = vmatpush.msrb.mxu0 %v978_v60  ;;  %v1070_v60 = vld [vmem:[#allocation5 + $0x528] sm:$0xff] }
  0xfe   : > { %v755_v35 = vpop.f32.mrf.mxu2  ;;  %1345 = vmatpush.msrb.mxu2 %v1040_v28  ;;  %v1008_v28 = vld [vmem:[#allocation5 + $0x338] sm:$0xff] }
  0xff   : > { %1299 = vmatpush.msrb.mxu0 %v976_v31  ;;  %v756_v4 = vadd.f32 %v755_v35, %v594_v55  ;;  %v1014_v55 = vld [vmem:[#allocation5 + $0x368] sm:$0xff]  ;;  %v1004_v35 = vld [vmem:[#allocation5 + $0x318] sm:$0xff] }
 0x100   : > { %1706 = vmatmul.msk.f32.gmra.mxu0 %vm386_vm2, %v2184_v16  ;;  %1346 = vmatpush.msrb.mxu2 %v1038_v34  ;;  %v1006_v31 = vld [vmem:[#allocation5 + $0x328] sm:$0xff] }
 0x101   : > { %v778_v18 = vpop.f32.mrf.mxu3  ;;  %v798_v38 = vpop.f32.mrf.mxu0  ;;  %1300 = vmatpush.msrb.mxu0 %v974_v36  ;;  %v1066_v34 = vld [vmem:[#allocation5 + $0x508] sm:$0xff] }
 0x102   : > { %v799_v41 = vadd.f32 %v798_v38, %v776_v24  ;;  %1347 = vmatpush.msrb.mxu2 %v1036_v50  ;;  %v779_v47 = vadd.f32 %v778_v18, %v756_v4  ;;  %v1002_v36 = vld [vmem:[#allocation5 + $0x308] sm:$0xff]  ;;  %v1408_v50 = vld [vmem:[%s2391_s5 + $0x78] sm:$0xff]  ;;  %v1405_v18 = vld [vmem:[%s2391_s5 + $0x60] sm:$0xff] }
 0x103   : > { %v821_v39 = vpop.f32.mrf.mxu1  ;;  %1301 = vmatpush.msrb.mxu0 %v972_v13  ;;  %v1407_v24 = vld [vmem:[%s2391_s5 + $0x70] sm:$0xff]  ;;  %v1406_v13 = vld [vmem:[%s2391_s5 + $0x68] sm:$0xff]  ;;  %v1404_v38 = vld [vmem:[%s2391_s5 + $0x58] sm:$0xff] }
 0x104   : > { %1348 = vmatpush.msrb.mxu2 %v1034_v40  ;;  %v822_v43 = vadd.f32 %v821_v39, %v799_v41  ;;  %v1403_v40 = vld [vmem:[%s2391_s5 + $0x50] sm:$0xff]  ;;  %v1401_v39 = vld [vmem:[%s2391_s5 + $0x40] sm:$0xff] }
 0x105   : > { %1349 = vmatmul.f32.vlgmr.msrb.gmra.mxu2 %v895_v22  ;;  %1302 = vmatpush.msrb.mxu0 %v970_v42  ;;  %v1402_v42 = vld [vmem:[%s2391_s5 + $0x48] sm:$0xff] }
 0x107   : > { %v844_v44 = vpop.f32.mrf.mxu2  ;;  %1426 = vmatpush.msra.mxu0 %v1408_v50 }
 0x108   : > { %v845_v45 = vadd.f32 %v844_v44, %v822_v43  ;;  %1303 = vmatmul.f32.vlgmr.msrb.gmra.mxu0 %v2167_v29  ;;  %v1400_v43 = vld [vmem:[%s2391_s5 + $0x38] sm:$0xff]  ;;  %v1399_v44 = vld [vmem:[%s2391_s5 + $0x30] sm:$0xff] }
 0x109   : > { %v801_v11 = vpop.f32.mrf.mxu0  ;;  %v867_v46 = vpop.f32.mrf.mxu3  ;;  %1427 = vmatpush.msra.mxu0 %v1407_v24 }
 0x10a   : > { %v802_v48 = vadd.f32 %v801_v11, %v779_v47  ;;  %v868_v49 = vadd.f32 %v867_v46, %v845_v45  ;;  %v1398_v47 = vld [vmem:[%s2391_s5 + $0x28] sm:$0xff]  ;;  %v1424_v45 = vld [vmem:[%s2391_s5 + $0xf8] sm:$0xff] }
 0x10b   : > { %v824_v51 = vpop.f32.mrf.mxu1  ;;  %1428 = vmatpush.msra.mxu0 %v1406_v13 }
 0x10c   : > { %v2195_v52 = vmax.f32 %v868_v49, 0.0  ;;  %v825_v56 = vadd.f32 %v824_v51, %v802_v48  ;;  %v1397_v48 = vld [vmem:[%s2391_s5 + $0x20] sm:$0xff]  ;;  %v1423_v49 = vld [vmem:[%s2391_s5 + $0xf0] sm:$0xff]  ;;  %v1396_v51 = vld [vmem:[%s2391_s5 + $0x18] sm:$0xff] }
 0x10d   : > { %1712 = vmatmul.msk.f32.gmra.mxu2 %vm386_vm2, %v2184_v16  ;;  %1429 = vmatpush.msra.mxu0 %v1405_v18 }
 0x10e   : > { %v882_v54 = vrot.slane %v2195_v52, 7  ;;  %1188 = vmatmul.f32.vlgmr.msrb.gmra.mxu3 %v2195_v52  ;;  %v896_v19 = vrot.slane %v2195_v52, 1 }
 0x10f   : > { %v847_v59 = vpop.f32.mrf.mxu2  ;;  %1356 = vmatpush.msrb.mxu3 %v1096_v53  ;;  %1430 = vmatpush.msra.mxu0 %v1404_v38  ;;  %v2269_v53 = vld [vmem:[%s2390_s4] sm:$0x3] }
 0x110   : > { %v848_v29 = vadd.f32 %v847_v59, %v825_v56  ;;  %1705 = vmatmul.msk.f32.vlgmr.msrb.gmra.mxu1 %vm2086_vm1, %v882_v54  ;;  %1306 = vmatmul.f32.gmra.mxu0 %v2176_v61  ;;  %v1086_v61 = vld [vmem:[#allocation5 + $0x5a8] sm:$0xff]  ;;  %v1099_v59 = vperm.slane %v2269_v53, 0 }
 0x111   : > { %v870_v0 = vpop.f32.mrf.mxu3  ;;  %1357 = vmatpush.msrb.mxu3 %v1094_v57  ;;  %1310 = vmatpush.msrb.mxu1 %v1032_v58  ;;  %v1395_v57 = vld [vmem:[%s2391_s5 + $0x10] sm:$0xff]  ;;  %v1421_v58 = vld [vmem:[%s2391_s5 + $0xe0] sm:$0xff] }
 0x112   : > { %v871_v1 = vadd.f32 %v870_v0, %v848_v29  ;;  %1431 = vmatpush.msra.mxu0 %v1403_v40  ;;  %v1394_v29 = vld [vmem:[%s2391_s5 + $0x8] sm:$0xff]  ;;  %v1419_v0 = vld [vmem:[%s2391_s5 + $0xd0] sm:$0xff] }
 0x113   : > { %1358 = vmatpush.msrb.mxu3 %v1092_v62  ;;  %1311 = vmatpush.msrb.mxu1 %v1030_v63  ;;  %v1420_v62 = vld [vmem:[%s2391_s5 + $0xd8] sm:$0xff]  ;;  %v1393_v63 = vld [vmem:[%s2391_s5] sm:$0xff] }
 0x114   : > { %v2204_v32 = vmax.f32 %v871_v1, 0.0  ;;  %1432 = vmatpush.msra.mxu0 %v1402_v42 }
 0x115   : > { %1359 = vmatpush.msrb.mxu3 %v1090_v2  ;;  %1312 = vmatpush.msrb.mxu1 %v1028_v3 }
 0x116   : > { %1191 = vmatmul.f32.gmra.mxu3 %v2204_v32  ;;  %v885_v7 = vrot.slane %v2204_v32, 7  ;;  %v897_v16 = vrot.slane %v2204_v32, 1  ;;  %1433 = vmatpush.msra.mxu0 %v1401_v39 }
 0x117   : > { %1360 = vmatpush.msrb.mxu3 %v1088_v5  ;;  %1313 = vmatpush.msrb.mxu1 %v1026_v6  ;;  %v1418_v5 = vld [vmem:[%s2391_s5 + $0xc8] sm:$0xff] }
 0x118   : > { %v886_v9 = vsel %vm373_vm0, %v882_v54, %v885_v7  ;;  %v898_v22 = vsel %vm386_vm2, %v896_v19, %v897_v16  ;;  %1434 = vmatpush.msra.mxu0 %v1400_v43 }
 0x119   : > { %1145 = vmatmul.f32.gmra.mxu1 %v886_v9  ;;  %1361 = vmatpush.msrb.mxu3 %v1086_v61 }
 0x11a   : > { %1314 = vmatpush.msrb.mxu1 %v1024_v8  ;;  %1435 = vmatpush.msra.mxu0 %v1399_v44  ;;  %v1417_v8 = vld [vmem:[%s2391_s5 + $0xc0] sm:$0xff] }
 0x11b   : > { %1362 = vmatpush.msrb.mxu3 %v1084_v10  ;;  %v1416_v10 = vld [vmem:[%s2391_s5 + $0xb8] sm:$0xff] }
 0x11c   : > { %1315 = vmatpush.msrb.mxu1 %v1022_v37  ;;  %1436 = vmatpush.msra.mxu0 %v1398_v47 }
 0x11d   : > { %1363 = vmatpush.msrb.mxu3 %v1082_v12 }
 0x11e   : > { %1711 = vmatmul.msk.f32.vlgmr.msra.gmra.mxu3 %vm2086_vm1, %v882_v54  ;;  %1316 = vmatpush.msrb.mxu1 %v1020_v14  ;;  %v1415_v14 = vld [vmem:[%s2391_s5 + $0xb0] sm:$0xff] }
 0x11f   : > { %1364 = vmatpush.msrb.mxu3 %v1080_v15  ;;  %1437 = vmatpush.msra.mxu0 %v1397_v48 }
 0x120   : > { %1317 = vmatpush.msrb.mxu1 %v1018_v17 }
 0x121   : > { %1234 = vmatmul.f32.vlgmr.msra.gmra.mxu1 %v898_v22  ;;  %1365 = vmatpush.msrb.mxu3 %v1078_v20 }
 0x122   : > { %1318 = vmatpush.msrb.mxu1 %v1016_v21  ;;  %1438 = vmatpush.msra.mxu0 %v1396_v51 }
 0x123   : > { %1366 = vmatpush.msrb.mxu3 %v1076_v23  ;;  %v1412_v23 = vld [vmem:[%s2391_s5 + $0x98] sm:$0xff] }
 0x124   : > { %1319 = vmatpush.msrb.mxu1 %v1014_v55  ;;  %1439 = vmatpush.msra.mxu0 %v1395_v57 }
 0x125   : > { %1367 = vmatpush.msrb.mxu3 %v1074_v25 }
 0x126   : > { %1283 = vmatmul.f32.gmra.mxu3 %v886_v9  ;;  %1320 = vmatpush.msrb.mxu1 %v1012_v26 }
 0x127   : > { %1368 = vmatpush.msrb.mxu3 %v1072_v33  ;;  %1440 = vmatpush.msra.mxu0 %v1394_v29  ;;  %v1411_v33 = vld [vmem:[%s2391_s5 + $0x90] sm:$0xff] }
 0x128   : > { %1321 = vmatpush.msrb.mxu1 %v1010_v27 }
 0x129   : > { %1707 = vmatmul.msk.f32.gmra.mxu1 %vm386_vm2, %v897_v16  ;;  %1369 = vmatpush.msrb.mxu3 %v1070_v60  ;;  %v1100_v60 = vperm.slane %v2269_v53, 1 }
 0x12a   : > { %1322 = vmatpush.msrb.mxu1 %v1008_v28  ;;  %1441 = vmatpush.msra.mxu0 %v1393_v63 }
 0x12b   : > { %1370 = vmatpush.msrb.mxu3 %v1068_v30 }
 0x12c   : > { %1323 = vmatpush.msrb.mxu1 %v1006_v31  ;;  %v1410_v31 = vld [vmem:[%s2391_s5 + $0x88] sm:$0xff] }
 0x12d   : > { %1371 = vmatpush.msrb.mxu3 %v1066_v34  ;;  %v1409_v34 = vld [vmem:[%s2391_s5 + $0x80] sm:$0xff] }
 0x12e   : > { %1324 = vmatpush.msrb.mxu1 %v1004_v35  ;;  %1372 = vmatmul.f32.vlgmr.msrb.gmra.mxu3 %v898_v22  ;;  %v1413_v22 = vld [vmem:[%s2391_s5 + $0xa0] sm:$0xff] }
 0x130   : > { %1325 = vmatpush.msrb.mxu1 %v1002_v36 }
 0x131   : > { %1326 = vmatmul.f32.vlgmr.msrb.gmra.mxu1 %v2195_v52  ;;  %v1422_v52 = vld [vmem:[%s2391_s5 + $0xe8] sm:$0xff] }
 0x132   : > { %1446 = vmatpush.msra.mxu1 %v1424_v45 }
 0x134   : > { %1447 = vmatpush.msra.mxu1 %v1423_v49 }
 0x136   : > { %1713 = vmatmul.msk.f32.gmra.mxu3 %vm386_vm2, %v897_v16  ;;  %1448 = vmatpush.msra.mxu1 %v1422_v52  ;;  %v1414_v16 = vld [vmem:[%s2391_s5 + $0xa8] sm:$0xff] }
 0x138   : > { %1449 = vmatpush.msra.mxu1 %v1421_v58 }
 0x139   : > { %1329 = vmatmul.f32.gmra.mxu1 %v2204_v32 }
 0x13a   : > { %1450 = vmatpush.msra.mxu1 %v1420_v62 }
 0x13c   : > { %1451 = vmatpush.msra.mxu1 %v1419_v0 }
 0x13e   : > { %1452 = vmatpush.msra.mxu1 %v1418_v5 }
 0x140   : > { %1453 = vmatpush.msra.mxu1 %v1417_v8 }
 0x142   : > { %1454 = vmatpush.msra.mxu1 %v1416_v10 }
 0x144   : > { %1455 = vmatpush.msra.mxu1 %v1415_v14 }
 0x146   : > { %1456 = vmatpush.msra.mxu1 %v1414_v16 }
 0x148   : > { %1457 = vmatpush.msra.mxu1 %v1413_v22 }
 0x14a   : > { %1458 = vmatpush.msra.mxu1 %v1412_v23 }
 0x14c   : > { %1459 = vmatpush.msra.mxu1 %v1411_v33 }
 0x14e   : > { %1460 = vmatpush.msra.mxu1 %v1410_v31 }
 0x150   : > { %1461 = vmatpush.msra.mxu1 %v1409_v34 }
 0x163   : > { %v1120_v41 = vpop.f32.mrf.mxu0 }
 0x164   : > { %v1121_v3 = vadd.f32 %v1120_v41, %v1099_v59 }
 0x167   : > { %v1166_v4 = vpop.f32.mrf.mxu2 }
 0x16d   : > { %v1123_v11 = vpop.f32.mrf.mxu0 }
 0x16e   : > { %v1124_v32 = vadd.f32 %v1123_v11, %v1099_v59 }
 0x170   : > { %v1169_v54 = vpop.f32.mrf.mxu2 }
 0x175   : > { %v1212_v1 = vpop.f32.mrf.mxu0 }
 0x178   : > { %v1258_v9 = vpop.f32.mrf.mxu2 }
 0x179   : > { %v1259_v24 = vadd.f32 %v1258_v9, %v1100_v60 }
 0x17d   : > { %v1215_v17 = vpop.f32.mrf.mxu0 }
 0x180   : > { %v1261_v55 = vpop.f32.mrf.mxu2 }
 0x181   : > { %v1262_v42 = vadd.f32 %v1261_v55, %v1100_v60 }
 0x185   : > { %v1304_v50 = vpop.f32.mrf.mxu0 }
 0x188   : > { %v1350_v40 = vpop.f32.mrf.mxu2 }
 0x18d   : > { %v1143_v46 = vpop.f32.mrf.mxu1 }
 0x18e   : > { %v1144_v6 = vadd.f32 %v1143_v46, %v1121_v3  ;;  %v1307_v46 = vpop.f32.mrf.mxu0 }
 0x190   : > { %v1167_v37 = vadd.f32 %v1166_v4, %v1144_v6 }
 0x191   : > { %v1189_v56 = vpop.f32.mrf.mxu3 }
 0x192   : > { %v1190_v19 = vadd.f32 %v1189_v56, %v1167_v37 }
 0x194   : > { %v1213_v25 = vadd.f32 %v1212_v1, %v1190_v19 }
 0x196   : > { %v1146_v2 = vpop.f32.mrf.mxu1 }
 0x197   : > { %v1147_v7 = vadd.f32 %v1146_v2, %v1124_v32  ;;  %v1467_v32 = vld [vmem:[%s2393_s7] sm:$0xff] }
 0x198   : > { %1470 = vst [vmem:[#allocation1] ss:$2 sm:$0xff] %v1467_v32 }
 0x199   : > { %v1192_v61 = vpop.f32.mrf.mxu3  ;;  %v1170_v12 = vadd.f32 %v1169_v54, %v1147_v7  ;;  %v1353_v54 = vpop.f32.mrf.mxu2  ;;  %v1425_v7 = vld [vmem:[%s2392_s6] sm:$0x1] }
 0x19b   : > { %v1193_v20 = vadd.f32 %v1192_v61, %v1170_v12  ;;  %v1468_v12 = vld [vmem:[%s2394_s8] sm:$0x3] }
 0x19c   : > { %v1474_v14 = vperm.slane %v1468_v12, 0 }
 0x19d   : > { %v1216_v26 = vadd.f32 %v1215_v17, %v1193_v20 }
 0x19e   : > { %v1235_v15 = vpop.f32.mrf.mxu1 }
 0x19f   : > { %v2315_v28 = vadd.f32 %v1235_v15, %v1213_v25  ;;  %v1471_v5 = vld.sshfl [vmem:[#allocation1] sm:$0xff pattern:$0x75316420]  ;;  %v1472_v6 = vld.sshfl [vmem:[#allocation1 + $0x8] sm:$0xff pattern:$0x75316420] }
 0x1a0   : > { %1714 = vmatpush.msk.msra.mxu2 %vm1482_vm3, %v1471_v5  ;;  %1716 = vmatpush.msk.msra.mxu3 %vm1482_vm3, %v1472_v6  ;;  %v1475_v15 = vperm.slane %v1468_v12, 1 }
 0x1a1   : > { %v1281_v21 = vpop.f32.mrf.mxu3 }
 0x1a2   : > { %v1282_v18 = vadd.f32 %v1281_v21, %v1259_v24 }
 0x1a4   : > { %v1305_v44 = vadd.f32 %v1304_v50, %v1282_v18 }
 0x1a6   : > { %v1238_v27 = vpop.f32.mrf.mxu1 }
 0x1a7   : > { %v2317_v30 = vadd.f32 %v1238_v27, %v1216_v26 }
 0x1a9   : > { %v1379_v35 = vadd.f32 %v2317_v30, %v2315_v28  ;;  %v1284_v36 = vpop.f32.mrf.mxu3 }
 0x1aa   : > { %v1285_v43 = vadd.f32 %v1284_v36, %v1262_v42 }
 0x1ab   : > { %v1380_v13 = vrot.slane %v1379_v35, 4 }
 0x1ac   : > { %v1308_v48 = vadd.f32 %v1307_v46, %v1285_v43 }
 0x1ad   : > { %v1381_v38 = vadd.f32 %v1380_v13, %v1379_v35 }
 0x1ae   : > { %v1327_v41 = vpop.f32.mrf.mxu1 }
 0x1af   : > { %v1382_v39 = vrot.slane %v1381_v38, 2  ;;  %v1328_v11 = vadd.f32 %v1327_v41, %v1305_v44 }
 0x1b1   : > { %v1383_v4 = vadd.f32 %v1382_v39, %v1381_v38  ;;  %v1373_v47 = vpop.f32.mrf.mxu3  ;;  %v1351_v52 = vadd.f32 %v1350_v40, %v1328_v11 }
 0x1b3   : > { %v1384_v45 = vrot.slane %v1383_v4, 1  ;;  %v2327_v58 = vadd.f32 %v1373_v47, %v1351_v52  ;;  %v1799_v52 = vld [vmem:[%s2074_s26] sm:$0xff] }
 0x1b5   : > { %v1385_v49 = vadd.f32 %v1384_v45, %v1383_v4 }
 0x1b6   : > { %v1330_v51 = vpop.f32.mrf.mxu1 }
 0x1b7   : > { %v1331_v53 = vadd.f32 %v1330_v51, %v1308_v48  ;;  %1442 = vmatmul.f32.vlgmr.msra.gmra.mxu0 %v1385_v49 }
 0x1b9   : > { %v1354_v56 = vadd.f32 %v1353_v54, %v1331_v53  ;;  %v1376_v57 = vpop.f32.mrf.mxu3  ;;  %v1800_v54 = vld [vmem:[%s2074_s26 + $0x10] sm:$0xff] }
 0x1bb   : > { %v2329_v59 = vadd.f32 %v1376_v57, %v1354_v56  ;;  %v1801_v57 = vld [vmem:[%s2074_s26 + $0x8] sm:$0xff] }
 0x1bd   : > { %v1386_v29 = vadd.f32 %v2329_v59, %v2327_v58 }
 0x1bf   : > { %v1387_v62 = vrot.slane %v1386_v29, 4 }
 0x1c1   : > { %v1388_v63 = vadd.f32 %v1387_v62, %v1386_v29  ;;  %v1802_v62 = vld [vmem:[%s2074_s26 + $0x18] sm:$0xff]  ;;  %s1883_s26 = scalar_lea.hbm %s2395_s9, 64 }
 0x1c2   : > { %p1885_p4 = scmp.lt.s32.totalorder %s1883_s26, %s1879_s21 }
 0x1c3   : > { %v1389_v0 = vrot.slane %v1388_v63, 2 }
 0x1c4   : > { %p1886_p7 = por %p1885_p4, %p1884_p3 }
 0x1c5   : > { %v1390_v1 = vadd.f32 %v1389_v0, %v1388_v63 }
 0x1c6   : > { %p1887_p8 = pnand %p1886_p7, %p1882_p2 }
 0x1c7   : > { %v1391_v2 = vrot.slane %v1390_v1, 1 }
 0x1c9   : > { %v1392_v3 = vadd.f32 %v1391_v2, %v1390_v1 }
 0x1cb   : > { %1462 = vmatmul.f32.vlgmr.msra.gmra.mxu1 %v1392_v3 }
 0x234   : > { %v1443_v61 = vpop.f32.mrf.mxu0 }
 0x235   : > { %v1444_v8 = vadd.f32 %v1443_v61, %v1425_v7 }
 0x248   : > { %v1463_v9 = vpop.f32.mrf.mxu1 }
 0x249   : > { %v1464_v10 = vadd.f32 %v1463_v9, %v1444_v8 }
 0x24b   : > { %v1466_v37 = vmax.f32 %v1464_v10, 0.0 }
 0x24d   : > { %1715 = vmatmul.msk.f32.vlgmr.msra.gmra.mxu2 %vm1478_vm4, %v1466_v37  ;;  %1717 = vmatmul.msk.f32.vlgmr.msra.gmra.mxu3 %vm1478_vm4, %v1466_v37 }
 0x2d0   : > { %v1504_v16 = vpop.f32.mrf.mxu2  ;;  %v1524_v17 = vpop.f32.mrf.mxu3 }
 0x2d1   : > { %v1505_v19 = vadd.f32 %v1504_v16, %v1474_v14  ;;  %v1525_v20 = vadd.f32 %v1524_v17, %v1475_v15 }
 0x2d3   : > { %v1718_v21 = vmul.f32 -1.442695, %v1505_v19  ;;  %v1719_v22 = vmul.f32 -1.442695, %v1525_v20 }
 0x2d5   : > { %1791 = vpow2.f32 %v1718_v21 }
 0x2d6   : > { %1793 = vpow2.f32 %v1719_v22 }
 0x2db   : > { %v1792_v23 = vpop.eup %1791 }
 0x2dc   : > { %v1794_v55 = vpop.eup %1793  ;;  %v1533_v25 = vadd.f32 1.0, %v1792_v23 }
 0x2dd   : > { %v1534_v26 = vadd.f32 1.0, %v1794_v55 }
 0x2de   : > { %1795 = vrcp.f32 %v1533_v25  ;;  %v1546_v35 = vand.u32 2147483648, %v1533_v25  ;;  %v1544_v24 = vand.u32 2147483647, %v1533_v25  ;;  %vm1540_vm7 = vweird.f32 %v1533_v25 }
 0x2df   : > { %1797 = vrcp.f32 %v1534_v26  ;;  %v1561_v13 = vand.u32 2147483648, %v1534_v26  ;;  %v1559_v38 = vand.u32 2147483647, %v1534_v26  ;;  %vm1555_vm9 = vweird.f32 %v1534_v26 }
 0x2e0   : > { %v1547_v41 = vor.u32 1.1754944e-38, %v1546_v35  ;;  %vm1545_vm10 = vcmp.eq.f32.partialorder %v1544_v24, 8.507059e+37 }
 0x2e1   : > { %v1562_v4 = vor.u32 1.1754944e-38, %v1561_v13  ;;  %vm1560_vm12 = vcmp.eq.f32.partialorder %v1559_v38, 8.507059e+37 }
 0x2e4   : > { %v1796_v33 = vpop.eup %1795 }
 0x2e5   : > { %v1798_v27 = vpop.eup %1797  ;;  %v1536_v60 = vmul.f32 %v1796_v33, %v1533_v25  ;;  %vm1541_vm5 = vweird.f32 %v1796_v33 }
 0x2e6   : > { %v1551_v31 = vmul.f32 %v1798_v27, %v1534_v26  ;;  %vm1556_vm6 = vweird.f32 %v1798_v27  ;;  %vm1542_vm8 = vmor %vm1540_vm7, %vm1541_vm5 }
 0x2e7   : > { %v1537_v34 = vsub.f32 1.0, %v1536_v60  ;;  %vm1557_vm11 = vmor %vm1555_vm9, %vm1556_vm6 }
 0x2e8   : > { %v1552_v36 = vsub.f32 1.0, %v1551_v31 }
 0x2e9   : > { %v1538_v50 = vmul.f32 %v1796_v33, %v1537_v34 }
 0x2ea   : > { %v1553_v18 = vmul.f32 %v1798_v27, %v1552_v36 }
 0x2eb   : > { %v1539_v40 = vadd.f32 %v1796_v33, %v1538_v50 }
 0x2ec   : > { %v1554_v42 = vadd.f32 %v1798_v27, %v1553_v18 }
 0x2ed   : > { %v1543_v39 = vsel %vm1542_vm8, %v1796_v33, %v1539_v40 }
 0x2ee   : > { %v1548_v43 = vsel %vm1545_vm10, %v1547_v41, %v1543_v39  ;;  %v1558_v44 = vsel %vm1557_vm11, %v1798_v27, %v1554_v42 }
 0x2ef   : > { %v1565_v47 = vperm.slane %v1548_v43, 0  ;;  %v1563_v45 = vsel %vm1560_vm12, %v1562_v4, %v1558_v44 }
 0x2f0   : > { %v1566_v11 = vperm.slane %v1563_v45, 0 }
 0x2f1   : > { %v1567_v46 = vmul.f32 %v1565_v47, %v2315_v28  ;;  %v1569_v48 = vmul.f32 %v1565_v47, %v2317_v30 }
 0x2f2   : > { %v1568_v49 = vmul.f32 %v1566_v11, %v2327_v58  ;;  %v1570_v51 = vmul.f32 %v1566_v11, %v2329_v59 }
 0x2f3   : > { %v1571_v53 = vadd.f32 %v1799_v52, %v1567_v46  ;;  %v1573_v56 = vadd.f32 %v1800_v54, %v1569_v48 }
 0x2f4   : > { %v1572_v29 = vadd.f32 %v1801_v57, %v1568_v49  ;;  %v1574_v63 = vadd.f32 %v1802_v62, %v1570_v51 }
 0x2f5   : > { %1575 = vst [vmem:[%s359_s13] sm:$0xff] %v1571_v53 }
 0x2f6   : > { %1576 = vst [vmem:[%s359_s13 + $0x8] sm:$0xff] %v1572_v29 }
 0x2f7   : > { %1577 = vst [vmem:[%s359_s13 + $0x10] sm:$0xff] %v1573_v56 }
 0x2f8   : > { %1578 = vst [vmem:[%s359_s13 + $0x18] sm:$0xff] %v1574_v63 }
 0x2f9   : > { %1890 = shalt.err (!%p1887_p8)
}
 0x2fa   : > { %s1939_s23 = smov 256   ;;  %s1940_s29 = smov 16  }
 0x2fb   : > { %1735 = dma.vmem_to_hbm [thread:$0]  (%p2029_p5), %s1593_s14, 512, %s1595_s16, %s1580_s17, %s1939_s23, %s1939_s23, %s1940_s29  }
 0x2fc PF: > { %p1752_p9 = scmp.ge.s32.totalorder %s1933_s12, 2  ;;  %s1609_s13 = sand.u32 1, %s1921_s30  }
 0x2fd   : > { %s1610_s24 = scalar_lea.sflag [#allocation4], %s1609_s13 }
 0x2fe   : > { %p1745_p10 = pnand %p1752_p9, %p2033_p6 }
 0x300   : > { %p1746_p11 = pneg %p1745_p10 }
 0x302   : > { %1916 = dma.done.wait (%p1746_p11), %s1610_s24, 512  }
 0x303   : > { %1918 = vsyncadd (%p1746_p11), %s1610_s24, 4294966784  ;;  %p21_p12 = scmp.ge.s32.totalorder %s2016_s15, 4   ;;  %s2401_s30 = smov %s1925_s10 }
 0x304   : > { %s2402_s10 = smov %s1929_s11  ;;  %s2403_s11 = smov %s2027_s18 }
 0x305   : > { %s2404_s12 = smov %s2016_s15  ;;  %23 = sbr.rel (!%p21_p12) target bundleno = 5 (0x5), region = 100 }
 0x30a   :  { %1616 = vsyncpa [#allocation3], 1 }
 0x30b   :  { %1618 = vsyncpa [#allocation3 + $0x1], 1 }
 0x30c   :  { %1619 = vsyncpa [#allocation6], 1 }
 0x30d   :  { %1620 = vsyncpa [#allocation4], 1 }
 0x30e   :  { %1622 = vsyncpa [#allocation4 + $0x1], 1 }

</bundles_post_ra>
